<compile_context>
chip_gen: v7x
topology: tpu7x:2x2x1
jax: 0.10.0
libtpu: 0.0.40
codegen_flags: <defaults>
</compile_context>

<pallas_src>
import functools
import math

import jax
import jax.numpy as jnp
from jax.experimental import pallas as pl
from jax.experimental.pallas import tpu as pltpu

# ----------------------------- configuration -------------------------------
B, V, N = 2, 4, 8                 # batch, visit_thresh, visit_code_num
NUM_NODES, NUM_EDGES = 15, 7
NODE_ATTR_DIM, EDGE_ATTR_DIM = 16, 16
HIDDEN = 32                       # hidden_dim == start_embed_dim (required)
OUT_DIM = NUM_NODES + 1           # out_dim (logits over codes)
HEADS = 2
DEPTH = 1
SET_OUT = 1                       # set_trans_out_num (must be 1: model squeezes it)
MAX_WEEKS = 10
GNN_LAYERS = 1                    # gnn_type = 'GAT'


# --------------------------- weight-slab layout ------------------------------
def _slab_layout(depth, set_out):
    nb = 2 * depth + 1            # enc blocks + PMA + dec blocks
    lay = dict(nb=nb)
    # slab A ((H,H) matrices, bf16)
    lay["A_w1"] = 0               # FFN weight per attention block
    lay["A_wo"] = nb              # output projection per attention block
    lay["A_outw"] = 2 * nb        # set-transformer output projection
    lay["A_vprojw"] = 2 * nb + 1  # visit_projector weight (zero-padded to (H,H))
    lay["A_wih"] = 2 * nb + 2     # GRU W_i{r,z,n}^T
    lay["A_whh"] = 2 * nb + 5     # GRU W_h{r,z,n}^T
    lay["A_n"] = 2 * nb + 8
    # slab D ((H,) vectors, f32)
    lay["D_b1"] = 0
    lay["D_outb"] = nb
    lay["D_vprojb"] = nb + 1
    lay["D_seed"] = nb + 2
    lay["D_bih"] = nb + 2 + set_out
    lay["D_bhh"] = nb + 5 + set_out
    lay["D_h0"] = nb + 8 + set_out
    lay["D_n"] = nb + 9 + set_out
    return lay


def _pack_slabs(st, vproj_w, vproj_b, gru, h0):
    """Pack all small weights into 3 slabs (cuts DMA descriptor count ~10x)."""
    H = HIDDEN
    blocks = list(st["enc"]) + [st["pma"]] + list(st["dec"])
    w1s = [b["w1"] for b in blocks]
    wos = [b["wo"] for b in blocks]
    vproj_w_pad = jnp.zeros((H, H), jnp.float32).at[:, :vproj_w.shape[1]].set(vproj_w)
    # NOTE: kernel computes x @ W; loading real PyTorch nn.Linear checkpoints
    # (stored (out,in)) would require transposing these first.
    wih, whh = gru["wih"], gru["whh"]
    wih_g = [wih[g * H:(g + 1) * H, :].T for g in range(3)]   # (in,out) per gate
    whh_g = [whh[g * H:(g + 1) * H, :].T for g in range(3)]
    slab_a = jnp.stack(w1s + wos + [st["out_w"], vproj_w_pad] + wih_g + whh_g,
                       axis=0).astype(jnp.bfloat16)
    # fused QKV weight per attention block: columns [Q | K | V], per-head column
    # groups of width dh inside each of Q/K/V.
    slab_qkv = jnp.stack(
        [jnp.concatenate([b["wq"], b["wk"], b["wv"]], axis=1) for b in blocks],
        axis=0).astype(jnp.bfloat16)
    b1s = [b["b1"].reshape(H) for b in blocks]
    vproj_b_pad = jnp.zeros((H,), jnp.float32).at[:vproj_b.shape[0]].set(vproj_b)
    seeds = [st["pma"]["seed"][s] for s in range(SET_OUT)]
    bih_g = [gru["bih"][g * H:(g + 1) * H] for g in range(3)]
    bhh_g = [gru["bhh"][g * H:(g + 1) * H] for g in range(3)]
    slab_d = jnp.stack(b1s + [st["out_b"].reshape(H), vproj_b_pad] + seeds
                       + bih_g + bhh_g + [h0.reshape(H)],
                       axis=0).astype(jnp.float32)
    return slab_a, slab_qkv, slab_d


# --------------------------- fused per-patient kernel ------------------------
def _mpcare_fused_kernel(x_ref, demb_ref, encb_ref, pmab_ref, decb_ref,
                         mat_ref, qkv_ref, vec_ref,
                         st_ref, out1_ref, gru_ref,
                         *, depth, heads, hidden, set_out, out_dim, n_visits, lay):
    """One grid step == one patient: V visits * N codes, then the GRU over visits."""
    f32, bf16 = jnp.float32, jnp.bfloat16
    H = hidden
    dh = H // heads
    scale = 1.0 / math.sqrt(dh)

    D = vec_ref[...]                              # (ND, H) f32, tiny

    def vec(i):                                   # (1, H) row of the vector slab
        return D[i:i + 1, :]

    def mha(q_in, kv_in, bias, blk, fused_qkv):
        wqkv = qkv_ref[blk]                       # (H, 3H) bf16
        if fused_qkv:                             # self-attention: one wide matmul
            qkv = jnp.dot(q_in.astype(bf16), wqkv, preferred_element_type=f32)
            q_all, k_all, v_all = qkv[:, :H], qkv[:, H:2 * H], qkv[:, 2 * H:]
        else:                                     # PMA: queries != keys
            q_all = jnp.dot(q_in.astype(bf16), wqkv[:, :H],
                            preferred_element_type=f32)
            kv = jnp.dot(kv_in.astype(bf16), wqkv[:, H:],
                         preferred_element_type=f32)
            k_all, v_all = kv[:, :H], kv[:, H:]
        wo = mat_ref[lay["A_wo"] + blk]           # (H, H) bf16
        out = jnp.zeros((q_in.shape[0], H), f32)
        for hd in range(heads):
            sl = slice(hd * dh, (hd + 1) * dh)
            s = jnp.einsum('md,nd->mn', q_all[:, sl].astype(bf16),
                           k_all[:, sl].astype(bf16),
                           preferred_element_type=f32) * scale + bias
            s = s - jnp.max(s, axis=-1, keepdims=True)
            p = jnp.exp(s)
            p = p * pl.reciprocal(jnp.sum(p, axis=-1, keepdims=True), approx=True)
            o = jnp.dot(p.astype(bf16), v_all[:, sl].astype(bf16),
                        preferred_element_type=f32)
            out = out + jnp.dot(o.astype(bf16), wo[sl, :],
                                preferred_element_type=f32)
        return out

    def ffn(h, blk):
        w1 = mat_ref[lay["A_w1"] + blk]
        return jax.nn.relu(
            jnp.dot(h.astype(bf16), w1, preferred_element_type=f32)
            + vec(lay["D_b1"] + blk))

    x = x_ref[0]                  # (V*N, H)  f32 tokens of this patient
    enc_bias = encb_ref[0]        # (V*N, V*N) key-pad + block-diag cross-visit mask
    pma_bias = pmab_ref[0]        # (V*SET_OUT, V*N)
    dec_bias = decb_ref[...]      # (V*SET_OUT, V*SET_OUT) block-diag

    # ---- encoder SABs (all visits of the patient batched, block-diag mask) ----
    # TODO(synk): SetTransformer class is not in the snippet; standard SAB
    # encoder / PMA / SAB decoder with key masking is implemented.
    h = x
    for d in range(depth):
        h = h + mha(h, h, enc_bias, d, True)
        h = h + ffn(h, d)

    # ---- PMA: one learned seed per visit attends to that visit's codes ----
    blk = depth
    seed = D[lay["D_seed"]:lay["D_seed"] + set_out, :]          # (S, H)
    q_seed = jnp.concatenate([seed] * n_visits, axis=0)         # (V*S, H)
    o = q_seed + mha(q_seed, h, pma_bias, blk, False)
    o = o + ffn(o, blk)

    # ---- decoder SABs (block-diagonal over per-visit outputs, no key mask) ----
    for d in range(depth):
        blk = depth + 1 + d
        o = o + mha(o, o, dec_bias, blk, True)
        o = o + ffn(o, blk)

    # ---- set-transformer output projection -> visit embeddings ----
    st = jnp.dot(o.astype(bf16), mat_ref[lay["A_outw"]],
                 preferred_element_type=f32) + vec(lay["D_outb"])    # (V, H)
    st_ref[0] = st

    # ---- fused visit_projector ----
    out1 = jnp.dot(st.astype(bf16), mat_ref[lay["A_vprojw"]],
                   preferred_element_type=f32) + vec(lay["D_vprojb"])
    out1_ref[0] = out1[:, :out_dim]

    # ---- fused GRU over this patient's visits ----
    xg = (st + demb_ref[0]).astype(bf16)          # (V, H) GRU inputs
    # input projections hoisted out of the recurrence (one matmul per gate)
    gi = [jnp.dot(xg, mat_ref[lay["A_wih"] + g], preferred_element_type=f32)
          + vec(lay["D_bih"] + g) for g in range(3)]
    whh = [mat_ref[lay["A_whh"] + g] for g in range(3)]
    bhh = [vec(lay["D_bhh"] + g) for g in range(3)]
    hh = vec(lay["D_h0"])                         # (1, H) initial hidden
    rows = []
    # V is small & static: fully-unrolled recurrence (== fori_loop(unroll=True)
    # but with static gi indices; no grid steps on the serial chain).
    for t in range(n_visits):
        hb = hh.astype(bf16)
        gh_r = jnp.dot(hb, whh[0], preferred_element_type=f32) + bhh[0]
        gh_z = jnp.dot(hb, whh[1], preferred_element_type=f32) + bhh[1]
        gh_n = jnp.dot(hb, whh[2], preferred_element_type=f32) + bhh[2]
        r = jax.nn.sigmoid(gi[0][t:t + 1, :] + gh_r)
        z = jax.nn.sigmoid(gi[1][t:t + 1, :] + gh_z)
        n = jnp.tanh(gi[2][t:t + 1, :] + r * gh_n)
        hh = (1.0 - z) * n + z * hh
        rows.append(hh)
    gru_ref[0] = jnp.concatenate(rows, axis=0)    # (V, H)


def mpcare_sets_and_gru(xv, type_embed, attn_mask, data_embed, st_params,
                        vproj_w, vproj_b, gru_params, h0):
    """Single pallas_call: SetTransformer + visit_projector + GRU, per patient."""
    Bc, Vc, Nc, H = xv.shape
    T = Vc * Nc
    depth = len(st_params["enc"])
    assert SET_OUT == 1, "model squeezes the set-transformer output axis"
    VS = Vc * SET_OUT
    out_dim = vproj_w.shape[1]

    x = (xv + type_embed).reshape(Bc, T, H).astype(jnp.float32)

    # host-built additive masks: key-pad bias + block-diagonal cross-visit mask
    keypad = attn_mask.reshape(Bc, T)                          # True = padded code
    set_tok = jnp.repeat(jnp.arange(Vc), Nc)                   # visit id per token
    set_q = jnp.repeat(jnp.arange(Vc), SET_OUT)                # visit id per query
    neg = jnp.float32(-1e9)
    enc_bias = jnp.where((set_tok[:, None] == set_tok[None, :])[None]
                         & ~keypad[:, None, :], 0.0, neg).astype(jnp.float32)
    pma_bias = jnp.where((set_q[:, None] == set_tok[None, :])[None]
                         & ~keypad[:, None, :], 0.0, neg).astype(jnp.float32)
    dec_bias = jnp.where(set_q[:, None] == set_q[None, :],
                         0.0, neg).astype(jnp.float32)

    slab_a, slab_qkv, slab_d = _pack_slabs(st_params, vproj_w, vproj_b,
                                           gru_params, h0)
    lay = _slab_layout(depth, SET_OUT)

    kernel = functools.partial(
        _mpcare_fused_kernel, depth=depth, heads=HEADS, hidden=H,
        set_out=SET_OUT, out_dim=out_dim, n_visits=Vc, lay=lay)

    st, out1, gru_out = pl.pallas_call(
        kernel,
        out_shape=(jax.ShapeDtypeStruct((Bc, Vc, H), jnp.float32),
                   jax.ShapeDtypeStruct((Bc, Vc, out_dim), jnp.float32),
                   jax.ShapeDtypeStruct((Bc, Vc, H), jnp.float32)),
        grid=(Bc,),
        in_specs=[
            pl.BlockSpec((1, T, H), lambda i: (i, 0, 0)),       # tokens
            pl.BlockSpec((1, Vc, H), lambda i: (i, 0, 0)),      # data_embed
            pl.BlockSpec((1, T, T), lambda i: (i, 0, 0)),       # encoder mask
            pl.BlockSpec((1, VS, T), lambda i: (i, 0, 0)),      # PMA mask
            pl.BlockSpec((VS, VS), lambda i: (0, 0)),           # decoder mask
            pl.BlockSpec(slab_a.shape, lambda i: (0, 0, 0)),    # matrix slab
            pl.BlockSpec(slab_qkv.shape, lambda i: (0, 0, 0)),  # fused-QKV slab
            pl.BlockSpec(slab_d.shape, lambda i: (0, 0)),       # vector slab
        ],
        out_specs=(pl.BlockSpec((1, Vc, H), lambda i: (i, 0, 0)),
                   pl.BlockSpec((1, Vc, out_dim), lambda i: (i, 0, 0)),
                   pl.BlockSpec((1, Vc, H), lambda i: (i, 0, 0))),
        compiler_params=pltpu.CompilerParams(
            dimension_semantics=("parallel",)),   # one patient per TC on v7x
    )(x, data_embed.astype(jnp.float32), enc_bias, pma_bias, dec_bias,
      slab_a, slab_qkv, slab_d)
    return st, out1, gru_out


# ----------------------------- model pieces ---------------------------------
def gat_layer(x, edge_index, edge_attr_e, p):
    # TODO(synk): exact PyG GATConv semantics (multi-head, dropout, etc.) not in
    # the snippet; single-head edge-featured GAT with self-loops.  The data-
    # dependent scatter / segment-softmax stays in plain JAX.
    Nn, H = x.shape
    h = x @ p["w"] + p["b"]
    e = edge_attr_e @ p["we"] + p["be"]
    loop = jnp.arange(Nn)
    src = jnp.concatenate([edge_index[0], loop])
    dst = jnp.concatenate([edge_index[1], loop])
    e = jnp.concatenate([e, jnp.zeros((Nn, H), jnp.float32)], axis=0)
    logits = jax.nn.leaky_relu(
        (h[src] * p["a_src"]).sum(-1)
        + (h[dst] * p["a_dst"]).sum(-1)
        + (e * p["a_edge"]).sum(-1),
        negative_slope=0.2,
    )
    m = jax.ops.segment_max(logits, dst, num_segments=Nn)
    w = jnp.exp(logits - m[dst])
    denom = jax.ops.segment_sum(w, dst, num_segments=Nn)
    alpha = w / (denom[dst] + 1e-16)
    return jax.ops.segment_sum(alpha[:, None] * h[src], dst, num_segments=Nn)


@jax.jit
def _forward_core(params, node_ids, visit_times, visit_order, attn_mask,
                  visit_node_type, edge_index, edge_ids):
    # node / edge embedding of the full id ranges (full_*_ids == arange)
    x = params["node_embed"].astype(jnp.float32)
    edge_attr = params["edge_embed"].astype(jnp.float32)
    # tiny projections left to XLA (a Pallas launch would cost more than the op)
    x = x @ params["node_proj_w"] + params["node_proj_b"]
    edge_attr = edge_attr @ params["edge_proj_w"] + params["edge_proj_b"]

    for lp in params["gat"]:
        x = gat_layer(x, edge_index, edge_attr[edge_ids], lp)
    code_embed = x                                           # (num_nodes+1, H)

    # per-visit code embeddings  (== torch.gather on the expanded table)
    xv = code_embed[node_ids]                                # (B, V, N, H)
    type_embed = params["type_embed"][visit_node_type]       # (B, V, N, H)

    # TODO(synk): DataEmbedding definition not in snippet; order + time
    # learned-embedding sum.
    data_embed = (params["order_embed"][visit_order]
                  + params["time_embed"][visit_times])       # (B, V, H)

    visit_embed, out_1, gru_out = mpcare_sets_and_gru(
        xv, type_embed, attn_mask, data_embed, params["set_trans"],
        params["visit_proj_w"], params["visit_proj_b"], params["gru"],
        params["h_0"])

    visit_mask = ~jnp.all(attn_mask, axis=-1)                # True = valid visit
    gru_idx = jnp.sum(visit_mask.astype(jnp.int32), axis=-1) - 1
    patient_embed = gru_out[jnp.arange(node_ids.shape[0]), gru_idx]   # (B, H)
    out_2 = patient_embed @ params["patient_proj_w"] + params["patient_proj_b"]
    return code_embed, visit_embed, out_1, patient_embed, out_2, visit_mask


def forward(params, node_ids, visit_times, visit_order, attn_mask,
            visit_node_type, edge_index, edge_ids):
    (code_embed, visit_embed, out_1, patient_embed, out_2,
     visit_mask) = _forward_core(params, node_ids, visit_times, visit_order,
                                 attn_mask, visit_node_type, edge_index,
                                 edge_ids)
    # dynamic-shape boolean selection of valid visits (eager JAX, outside jit)
    visit_embed_sel = visit_embed[visit_mask]                # (num_valid, H)
    out_1_sel = out_1[visit_mask]                            # (num_valid, OUT_DIM)

    embeddings = {"patient_embed": patient_embed,
                  "visit_embed": visit_embed_sel,
                  "code_embed": code_embed}
    return {"logits": [out_1_sel, out_2], "prototypes": None,
            "embeddings": embeddings, "scores": None}


# ----------------------------- parameter init -------------------------------
def init_params(key):
    ks = iter(jax.random.split(key, 80))

    def w(shape, scale=0.2):
        return (scale * jax.random.normal(next(ks), shape)).astype(jnp.float32)

    p = {}
    p["node_embed"] = w((NUM_NODES + 1, NODE_ATTR_DIM)).at[0].set(0.0)
    p["edge_embed"] = w((NUM_EDGES + 1, EDGE_ATTR_DIM)).at[0].set(0.0)
    p["node_proj_w"] = w((NODE_ATTR_DIM, HIDDEN)); p["node_proj_b"] = jnp.zeros((HIDDEN,))
    p["edge_proj_w"] = w((EDGE_ATTR_DIM, HIDDEN)); p["edge_proj_b"] = jnp.zeros((HIDDEN,))
    p["gat"] = [dict(w=w((HIDDEN, HIDDEN)), b=jnp.zeros((HIDDEN,)),
                     we=w((HIDDEN, HIDDEN)), be=jnp.zeros((HIDDEN,)),
                     a_src=w((HIDDEN,)), a_dst=w((HIDDEN,)), a_edge=w((HIDDEN,)))
                for _ in range(GNN_LAYERS)]
    p["type_embed"] = w((4, HIDDEN)).at[0].set(0.0)

    def attn_block():
        return dict(wq=w((HIDDEN, HIDDEN)), wk=w((HIDDEN, HIDDEN)),
                    wv=w((HIDDEN, HIDDEN)), wo=w((HIDDEN, HIDDEN)),
                    w1=w((HIDDEN, HIDDEN)), b1=jnp.zeros((HIDDEN,)))

    st = {"enc": [attn_block() for _ in range(DEPTH)],
          "dec": [attn_block() for _ in range(DEPTH)]}
    pma = attn_block(); pma["seed"] = w((SET_OUT, HIDDEN))
    st["pma"] = pma
    st["out_w"] = w((HIDDEN, HIDDEN)); st["out_b"] = jnp.zeros((HIDDEN,))
    p["set_trans"] = st

    p["order_embed"] = w((V, HIDDEN))
    p["time_embed"] = w((MAX_WEEKS + 1, HIDDEN))
    p["h_0"] = w((1, 1, HIDDEN))
    p["gru"] = dict(wih=w((3 * HIDDEN, HIDDEN)), whh=w((3 * HIDDEN, HIDDEN)),
                    bih=jnp.zeros((3 * HIDDEN,)), bhh=jnp.zeros((3 * HIDDEN,)))
    p["visit_proj_w"] = w((HIDDEN, OUT_DIM)); p["visit_proj_b"] = jnp.zeros((OUT_DIM,))
    p["patient_proj_w"] = w((HIDDEN, OUT_DIM)); p["patient_proj_b"] = jnp.zeros((OUT_DIM,))
    return p


# --------------------------------- main --------------------------------------
if __name__ == "__main__":
    key = jax.random.PRNGKey(0)
    kp, k1, k2, k3 = jax.random.split(key, 4)
    params = init_params(kp)

    # static graph
    edge_index = jnp.stack([jnp.array([1, 2, 3, 4, 5, 6, 7], dtype=jnp.int32),
                            jnp.array([2, 3, 4, 5, 6, 7, 8], dtype=jnp.int32)])
    edge_ids = jnp.arange(1, NUM_EDGES + 1, dtype=jnp.int32)

    # inputs
    node_ids = jax.random.randint(k1, (B, V, N), 1, NUM_NODES + 1)
    visit_node_type = jax.random.randint(k2, (B, V, N), 1, 4)
    visit_times = jax.random.randint(k3, (B, V), 0, MAX_WEEKS)
    visit_order = jnp.broadcast_to(jnp.arange(V), (B, V))

    valid_visits = jnp.array([3, 2])                               # per patient
    visit_valid = jnp.arange(V)[None, :] < valid_visits[:, None]   # (B, V)
    code_valid = jnp.arange(N)[None, None, :] < 5                  # 5 codes / visit
    attn_mask = ~(visit_valid[:, :, None] & code_valid)            # True = padded
    node_ids = jnp.where(attn_mask, 0, node_ids)
    visit_node_type = jnp.where(attn_mask, 0, visit_node_type)

    out = forward(params, node_ids, visit_times, visit_order, attn_mask,
                  visit_node_type, edge_index, edge_ids)
    jax.block_until_ready(out)

    assert out["logits"][0].shape == (int(valid_visits.sum()), OUT_DIM)
    assert out["logits"][1].shape == (B, OUT_DIM)
    assert out["embeddings"]["patient_embed"].shape == (B, HIDDEN)
    assert out["embeddings"]["visit_embed"].shape == (int(valid_visits.sum()), HIDDEN)
    assert out["embeddings"]["code_embed"].shape == (NUM_NODES + 1, HIDDEN)
    print("KERNEL_OK")
</pallas_src>

<mosaic_0001>
module attributes {stable_mosaic.version = 11 : i64} {
  func.func @_mpcare_fused_kernel(%arg0: i32, %arg1: memref<1x32x32xf32, #tpu.memory_space<vmem>>, %arg2: memref<1x4x32xf32, #tpu.memory_space<vmem>>, %arg3: memref<1x32x32xf32, #tpu.memory_space<vmem>>, %arg4: memref<1x4x32xf32, #tpu.memory_space<vmem>>, %arg5: memref<4x4xf32, #tpu.memory_space<vmem>>, %arg6: memref<14x32x32xbf16, #tpu.memory_space<vmem>>, %arg7: memref<3x32x96xbf16, #tpu.memory_space<vmem>>, %arg8: memref<13x32xf32, #tpu.memory_space<vmem>>, %arg9: memref<1x4x32xf32, #tpu.memory_space<vmem>>, %arg10: memref<1x4x16xf32, #tpu.memory_space<vmem>>, %arg11: memref<1x4x32xf32, #tpu.memory_space<vmem>>) attributes {dimension_semantics = [#tpu.dimension_semantics<parallel>], iteration_bounds = array<i64: 2>, scalar_prefetch = 0 : i64, scratch_operands = 0 : i64, tpu.core_type = #tpu.core_type<tc>, window_params = [{transform_indices = @transform_0, window_bounds = array<i64: 1, 32, 32>}, {transform_indices = @transform_1, window_bounds = array<i64: 1, 4, 32>}, {transform_indices = @transform_2, window_bounds = array<i64: 1, 32, 32>}, {transform_indices = @transform_3, window_bounds = array<i64: 1, 4, 32>}, {pipeline_mode = #tpu.pipeline_mode<synchronous>, transform_indices = @transform_4, window_bounds = array<i64: 4, 4>}, {pipeline_mode = #tpu.pipeline_mode<synchronous>, transform_indices = @transform_5, window_bounds = array<i64: 14, 32, 32>}, {pipeline_mode = #tpu.pipeline_mode<synchronous>, transform_indices = @transform_6, window_bounds = array<i64: 3, 32, 96>}, {pipeline_mode = #tpu.pipeline_mode<synchronous>, transform_indices = @transform_7, window_bounds = array<i64: 13, 32>}, {transform_indices = @transform_8, window_bounds = array<i64: 1, 4, 32>}, {transform_indices = @transform_9, window_bounds = array<i64: 1, 4, 16>}, {transform_indices = @transform_10, window_bounds = array<i64: 1, 4, 32>}]} {
    %c0 = arith.constant 0 : index
    %c0_0 = arith.constant 0 : index
    %0 = vector.load %arg8[%c0, %c0_0] : memref<13x32xf32, #tpu.memory_space<vmem>>, vector<13x32xf32>
    %c0_1 = arith.constant 0 : index
    %c0_2 = arith.constant 0 : index
    %c0_3 = arith.constant 0 : index
    %1 = vector.load %arg1[%c0_1, %c0_2, %c0_3] : memref<1x32x32xf32, #tpu.memory_space<vmem>>, vector<1x32x32xf32>
    %2 = vector.shape_cast %1 : vector<1x32x32xf32> to vector<32x32xf32>
    %c0_4 = arith.constant 0 : index
    %c0_5 = arith.constant 0 : index
    %c0_6 = arith.constant 0 : index
    %3 = vector.load %arg3[%c0_4, %c0_5, %c0_6] : memref<1x32x32xf32, #tpu.memory_space<vmem>>, vector<1x32x32xf32>
    %4 = vector.shape_cast %3 : vector<1x32x32xf32> to vector<32x32xf32>
    %c0_7 = arith.constant 0 : index
    %c0_8 = arith.constant 0 : index
    %c0_9 = arith.constant 0 : index
    %5 = vector.load %arg4[%c0_7, %c0_8, %c0_9] : memref<1x4x32xf32, #tpu.memory_space<vmem>>, vector<1x4x32xf32>
    %6 = vector.shape_cast %5 : vector<1x4x32xf32> to vector<4x32xf32>
    %c0_10 = arith.constant 0 : index
    %c0_11 = arith.constant 0 : index
    %7 = vector.load %arg5[%c0_10, %c0_11] : memref<4x4xf32, #tpu.memory_space<vmem>>, vector<4x4xf32>
    %c0_12 = arith.constant 0 : index
    %c0_13 = arith.constant 0 : index
    %c0_14 = arith.constant 0 : index
    %8 = vector.load %arg7[%c0_12, %c0_13, %c0_14] : memref<3x32x96xbf16, #tpu.memory_space<vmem>>, vector<1x32x96xbf16>
    %9 = vector.shape_cast %8 : vector<1x32x96xbf16> to vector<32x96xbf16>
    %10 = arith.truncf %2 : vector<32x32xf32> to vector<32x32xbf16>
    %cst = arith.constant dense<0.000000e+00> : vector<32x96xf32>
    %11 = tpu.matmul %10, %9, %cst {dimension_numbers = #tpu.dot_dimension_numbers<[1], [0], [0], [1], [0, 0, 1, 1], [], []>} : vector<32x32xbf16>, vector<32x96xbf16>, vector<32x96xf32> -> vector<32x96xf32>
    %12 = vector.extract_strided_slice %11 {offsets = [0, 0], sizes = [32, 32], strides = [1, 1]} : vector<32x96xf32> to vector<32x32xf32>
    %13 = vector.extract_strided_slice %11 {offsets = [0, 32], sizes = [32, 32], strides = [1, 1]} : vector<32x96xf32> to vector<32x32xf32>
    %14 = vector.extract_strided_slice %11 {offsets = [0, 64], sizes = [32, 32], strides = [1, 1]} : vector<32x96xf32> to vector<32x32xf32>
    %c3 = arith.constant 3 : index
    %c0_15 = arith.constant 0 : index
    %c0_16 = arith.constant 0 : index
    %15 = vector.load %arg6[%c3, %c0_15, %c0_16] : memref<14x32x32xbf16, #tpu.memory_space<vmem>>, vector<1x32x32xbf16>
    %16 = vector.shape_cast %15 : vector<1x32x32xbf16> to vector<32x32xbf16>
    %cst_17 = arith.constant 0.000000e+00 : f32
    %17 = vector.broadcast %cst_17 : f32 to vector<32x32xf32>
    %18 = vector.extract_strided_slice %12 {offsets = [0, 0], sizes = [32, 16], strides = [1, 1]} : vector<32x32xf32> to vector<32x16xf32>
    %19 = arith.truncf %18 : vector<32x16xf32> to vector<32x16xbf16>
    %20 = vector.extract_strided_slice %13 {offsets = [0, 0], sizes = [32, 16], strides = [1, 1]} : vector<32x32xf32> to vector<32x16xf32>
    %21 = arith.truncf %20 : vector<32x16xf32> to vector<32x16xbf16>
    "tpu.trace_start"() <{level = 10 : i32, message = "md,nd->mn"}> : () -> ()
    %cst_18 = arith.constant dense<0.000000e+00> : vector<32x32xf32>
    %22 = tpu.matmul %19, %21, %cst_18 {dimension_numbers = #tpu.dot_dimension_numbers<[1], [1], [0], [0], [0, 0, 1, 0], [], []>} : vector<32x16xbf16>, vector<32x16xbf16>, vector<32x32xf32> -> vector<32x32xf32>
    "tpu.trace_stop"() : () -> ()
    %cst_19 = arith.constant 2.500000e-01 : f32
    %23 = vector.broadcast %cst_19 : f32 to vector<32x32xf32>
    %24 = arith.mulf %22, %23 : vector<32x32xf32>
    %25 = arith.addf %24, %4 : vector<32x32xf32>
    %cst_20 = arith.constant dense<0xFF800000> : vector<32xf32>
    %26 = vector.multi_reduction <maximumf>, %25, %cst_20 [1] : vector<32x32xf32> to vector<32xf32>
    %27 = vector.shape_cast %26 : vector<32xf32> to vector<32x1xf32>
    %28 = vector.broadcast %27 : vector<32x1xf32> to vector<32x32xf32>
    %29 = arith.subf %25, %28 : vector<32x32xf32>
    %30 = math.exp %29 : vector<32x32xf32>
    %cst_21 = arith.constant dense<0.000000e+00> : vector<32xf32>
    %31 = vector.multi_reduction <add>, %30, %cst_21 [1] : vector<32x32xf32> to vector<32xf32>
    %32 = vector.shape_cast %31 : vector<32xf32> to vector<32x1xf32>
    %33 = tpu.reciprocal %32 {approx = true} : vector<32x1xf32> -> vector<32x1xf32>
    %34 = vector.broadcast %33 : vector<32x1xf32> to vector<32x32xf32>
    %35 = arith.mulf %30, %34 : vector<32x32xf32>
    %36 = arith.truncf %35 : vector<32x32xf32> to vector<32x32xbf16>
    %37 = vector.extract_strided_slice %14 {offsets = [0, 0], sizes = [32, 16], strides = [1, 1]} : vector<32x32xf32> to vector<32x16xf32>
    %38 = arith.truncf %37 : vector<32x16xf32> to vector<32x16xbf16>
    %cst_22 = arith.constant dense<0.000000e+00> : vector<32x16xf32>
    %39 = tpu.matmul %36, %38, %cst_22 {dimension_numbers = #tpu.dot_dimension_numbers<[1], [0], [0], [1], [0, 0, 1, 1], [], []>} : vector<32x32xbf16>, vector<32x16xbf16>, vector<32x16xf32> -> vector<32x16xf32>
    %40 = arith.truncf %39 : vector<32x16xf32> to vector<32x16xbf16>
    %41 = vector.extract_strided_slice %16 {offsets = [0, 0], sizes = [16, 32], strides = [1, 1]} : vector<32x32xbf16> to vector<16x32xbf16>
    %cst_23 = arith.constant dense<0.000000e+00> : vector<32x32xf32>
    %42 = tpu.matmul %40, %41, %cst_23 {dimension_numbers = #tpu.dot_dimension_numbers<[1], [0], [0], [1], [0, 0, 1, 1], [], []>} : vector<32x16xbf16>, vector<16x32xbf16>, vector<32x32xf32> -> vector<32x32xf32>
    %43 = arith.addf %17, %42 : vector<32x32xf32>
    %44 = vector.extract_strided_slice %12 {offsets = [0, 16], sizes = [32, 16], strides = [1, 1]} : vector<32x32xf32> to vector<32x16xf32>
    %45 = arith.truncf %44 : vector<32x16xf32> to vector<32x16xbf16>
    %46 = vector.extract_strided_slice %13 {offsets = [0, 16], sizes = [32, 16], strides = [1, 1]} : vector<32x32xf32> to vector<32x16xf32>
    %47 = arith.truncf %46 : vector<32x16xf32> to vector<32x16xbf16>
    "tpu.trace_start"() <{level = 10 : i32, message = "md,nd->mn"}> : () -> ()
    %cst_24 = arith.constant dense<0.000000e+00> : vector<32x32xf32>
    %48 = tpu.matmul %45, %47, %cst_24 {dimension_numbers = #tpu.dot_dimension_numbers<[1], [1], [0], [0], [0, 0, 1, 0], [], []>} : vector<32x16xbf16>, vector<32x16xbf16>, vector<32x32xf32> -> vector<32x32xf32>
    "tpu.trace_stop"() : () -> ()
    %cst_25 = arith.constant 2.500000e-01 : f32
    %49 = vector.broadcast %cst_25 : f32 to vector<32x32xf32>
    %50 = arith.mulf %48, %49 : vector<32x32xf32>
    %51 = arith.addf %50, %4 : vector<32x32xf32>
    %cst_26 = arith.constant dense<0xFF800000> : vector<32xf32>
    %52 = vector.multi_reduction <maximumf>, %51, %cst_26 [1] : vector<32x32xf32> to vector<32xf32>
    %53 = vector.shape_cast %52 : vector<32xf32> to vector<32x1xf32>
    %54 = vector.broadcast %53 : vector<32x1xf32> to vector<32x32xf32>
    %55 = arith.subf %51, %54 : vector<32x32xf32>
    %56 = math.exp %55 : vector<32x32xf32>
    %cst_27 = arith.constant dense<0.000000e+00> : vector<32xf32>
    %57 = vector.multi_reduction <add>, %56, %cst_27 [1] : vector<32x32xf32> to vector<32xf32>
    %58 = vector.shape_cast %57 : vector<32xf32> to vector<32x1xf32>
    %59 = tpu.reciprocal %58 {approx = true} : vector<32x1xf32> -> vector<32x1xf32>
    %60 = vector.broadcast %59 : vector<32x1xf32> to vector<32x32xf32>
    %61 = arith.mulf %56, %60 : vector<32x32xf32>
    %62 = arith.truncf %61 : vector<32x32xf32> to vector<32x32xbf16>
    %63 = vector.extract_strided_slice %14 {offsets = [0, 16], sizes = [32, 16], strides = [1, 1]} : vector<32x32xf32> to vector<32x16xf32>
    %64 = arith.truncf %63 : vector<32x16xf32> to vector<32x16xbf16>
    %cst_28 = arith.constant dense<0.000000e+00> : vector<32x16xf32>
    %65 = tpu.matmul %62, %64, %cst_28 {dimension_numbers = #tpu.dot_dimension_numbers<[1], [0], [0], [1], [0, 0, 1, 1], [], []>} : vector<32x32xbf16>, vector<32x16xbf16>, vector<32x16xf32> -> vector<32x16xf32>
    %66 = arith.truncf %65 : vector<32x16xf32> to vector<32x16xbf16>
    %67 = vector.extract_strided_slice %16 {offsets = [16, 0], sizes = [16, 32], strides = [1, 1]} : vector<32x32xbf16> to vector<16x32xbf16>
    %cst_29 = arith.constant dense<0.000000e+00> : vector<32x32xf32>
    %68 = tpu.matmul %66, %67, %cst_29 {dimension_numbers = #tpu.dot_dimension_numbers<[1], [0], [0], [1], [0, 0, 1, 1], [], []>} : vector<32x16xbf16>, vector<16x32xbf16>, vector<32x32xf32> -> vector<32x32xf32>
    %69 = arith.addf %43, %68 : vector<32x32xf32>
    %70 = arith.addf %2, %69 : vector<32x32xf32>
    %c0_30 = arith.constant 0 : index
    %c0_31 = arith.constant 0 : index
    %c0_32 = arith.constant 0 : index
    %71 = vector.load %arg6[%c0_30, %c0_31, %c0_32] : memref<14x32x32xbf16, #tpu.memory_space<vmem>>, vector<1x32x32xbf16>
    %72 = vector.shape_cast %71 : vector<1x32x32xbf16> to vector<32x32xbf16>
    %73 = arith.truncf %70 : vector<32x32xf32> to vector<32x32xbf16>
    %cst_33 = arith.constant dense<0.000000e+00> : vector<32x32xf32>
    %74 = tpu.matmul %73, %72, %cst_33 {dimension_numbers = #tpu.dot_dimension_numbers<[1], [0], [0], [1], [0, 0, 1, 1], [], []>} : vector<32x32xbf16>, vector<32x32xbf16>, vector<32x32xf32> -> vector<32x32xf32>
    %75 = vector.extract_strided_slice %0 {offsets = [0, 0], sizes = [1, 32], strides = [1, 1]} : vector<13x32xf32> to vector<1x32xf32>
    %76 = vector.broadcast %75 : vector<1x32xf32> to vector<32x32xf32>
    %77 = arith.addf %74, %76 : vector<32x32xf32>
    %cst_34 = arith.constant 0.000000e+00 : f32
    %78 = vector.broadcast %cst_34 : f32 to vector<32x32xf32>
    %79 = arith.maximumf %77, %78 : vector<32x32xf32>
    %80 = arith.addf %70, %79 : vector<32x32xf32>
    %81 = vector.extract_strided_slice %0 {offsets = [5, 0], sizes = [1, 32], strides = [1, 1]} : vector<13x32xf32> to vector<1x32xf32>
    %82 = tpu.concatenate %81, %81, %81, %81 in 0 : vector<1x32xf32>, vector<1x32xf32>, vector<1x32xf32>, vector<1x32xf32> -> vector<4x32xf32>
    %c1 = arith.constant 1 : index
    %c0_35 = arith.constant 0 : index
    %c0_36 = arith.constant 0 : index
    %83 = vector.load %arg7[%c1, %c0_35, %c0_36] : memref<3x32x96xbf16, #tpu.memory_space<vmem>>, vector<1x32x96xbf16>
    %84 = vector.shape_cast %83 : vector<1x32x96xbf16> to vector<32x96xbf16>
    %85 = arith.truncf %82 : vector<4x32xf32> to vector<4x32xbf16>
    %86 = vector.extract_strided_slice %84 {offsets = [0, 0], sizes = [32, 32], strides = [1, 1]} : vector<32x96xbf16> to vector<32x32xbf16>
    %cst_37 = arith.constant dense<0.000000e+00> : vector<4x32xf32>
    %87 = tpu.matmul %85, %86, %cst_37 {dimension_numbers = #tpu.dot_dimension_numbers<[1], [0], [0], [1], [0, 0, 1, 1], [], []>} : vector<4x32xbf16>, vector<32x32xbf16>, vector<4x32xf32> -> vector<4x32xf32>
    %88 = arith.truncf %80 : vector<32x32xf32> to vector<32x32xbf16>
    %89 = vector.extract_strided_slice %84 {offsets = [0, 32], sizes = [32, 64], strides = [1, 1]} : vector<32x96xbf16> to vector<32x64xbf16>
    %cst_38 = arith.constant dense<0.000000e+00> : vector<32x64xf32>
    %90 = tpu.matmul %88, %89, %cst_38 {dimension_numbers = #tpu.dot_dimension_numbers<[1], [0], [0], [1], [0, 0, 1, 1], [], []>} : vector<32x32xbf16>, vector<32x64xbf16>, vector<32x64xf32> -> vector<32x64xf32>
    %91 = vector.extract_strided_slice %90 {offsets = [0, 0], sizes = [32, 32], strides = [1, 1]} : vector<32x64xf32> to vector<32x32xf32>
    %92 = vector.extract_strided_slice %90 {offsets = [0, 32], sizes = [32, 32], strides = [1, 1]} : vector<32x64xf32> to vector<32x32xf32>
    %c4 = arith.constant 4 : index
    %c0_39 = arith.constant 0 : index
    %c0_40 = arith.constant 0 : index
    %93 = vector.load %arg6[%c4, %c0_39, %c0_40] : memref<14x32x32xbf16, #tpu.memory_space<vmem>>, vector<1x32x32xbf16>
    %94 = vector.shape_cast %93 : vector<1x32x32xbf16> to vector<32x32xbf16>
    %cst_41 = arith.constant 0.000000e+00 : f32
    %95 = vector.broadcast %cst_41 : f32 to vector<4x32xf32>
    %96 = vector.extract_strided_slice %87 {offsets = [0, 0], sizes = [4, 16], strides = [1, 1]} : vector<4x32xf32> to vector<4x16xf32>
    %97 = arith.truncf %96 : vector<4x16xf32> to vector<4x16xbf16>
    %98 = vector.extract_strided_slice %91 {offsets = [0, 0], sizes = [32, 16], strides = [1, 1]} : vector<32x32xf32> to vector<32x16xf32>
    %99 = arith.truncf %98 : vector<32x16xf32> to vector<32x16xbf16>
    "tpu.trace_start"() <{level = 10 : i32, message = "md,nd->mn"}> : () -> ()
    %cst_42 = arith.constant dense<0.000000e+00> : vector<4x32xf32>
    %100 = tpu.matmul %97, %99, %cst_42 {dimension_numbers = #tpu.dot_dimension_numbers<[1], [1], [0], [0], [0, 0, 1, 0], [], []>} : vector<4x16xbf16>, vector<32x16xbf16>, vector<4x32xf32> -> vector<4x32xf32>
    "tpu.trace_stop"() : () -> ()
    %cst_43 = arith.constant 2.500000e-01 : f32
    %101 = vector.broadcast %cst_43 : f32 to vector<4x32xf32>
    %102 = arith.mulf %100, %101 : vector<4x32xf32>
    %103 = arith.addf %102, %6 : vector<4x32xf32>
    %cst_44 = arith.constant dense<0xFF800000> : vector<4xf32>
    %104 = vector.multi_reduction <maximumf>, %103, %cst_44 [1] : vector<4x32xf32> to vector<4xf32>
    %105 = vector.shape_cast %104 : vector<4xf32> to vector<4x1xf32>
    %106 = vector.broadcast %105 : vector<4x1xf32> to vector<4x32xf32>
    %107 = arith.subf %103, %106 : vector<4x32xf32>
    %108 = math.exp %107 : vector<4x32xf32>
    %cst_45 = arith.constant dense<0.000000e+00> : vector<4xf32>
    %109 = vector.multi_reduction <add>, %108, %cst_45 [1] : vector<4x32xf32> to vector<4xf32>
    %110 = vector.shape_cast %109 : vector<4xf32> to vector<4x1xf32>
    %111 = tpu.reciprocal %110 {approx = true} : vector<4x1xf32> -> vector<4x1xf32>
    %112 = vector.broadcast %111 : vector<4x1xf32> to vector<4x32xf32>
    %113 = arith.mulf %108, %112 : vector<4x32xf32>
    %114 = arith.truncf %113 : vector<4x32xf32> to vector<4x32xbf16>
    %115 = vector.extract_strided_slice %92 {offsets = [0, 0], sizes = [32, 16], strides = [1, 1]} : vector<32x32xf32> to vector<32x16xf32>
    %116 = arith.truncf %115 : vector<32x16xf32> to vector<32x16xbf16>
    %cst_46 = arith.constant dense<0.000000e+00> : vector<4x16xf32>
    %117 = tpu.matmul %114, %116, %cst_46 {dimension_numbers = #tpu.dot_dimension_numbers<[1], [0], [0], [1], [0, 0, 1, 1], [], []>} : vector<4x32xbf16>, vector<32x16xbf16>, vector<4x16xf32> -> vector<4x16xf32>
    %118 = arith.truncf %117 : vector<4x16xf32> to vector<4x16xbf16>
    %119 = vector.extract_strided_slice %94 {offsets = [0, 0], sizes = [16, 32], strides = [1, 1]} : vector<32x32xbf16> to vector<16x32xbf16>
    %cst_47 = arith.constant dense<0.000000e+00> : vector<4x32xf32>
    %120 = tpu.matmul %118, %119, %cst_47 {dimension_numbers = #tpu.dot_dimension_numbers<[1], [0], [0], [1], [0, 0, 1, 1], [], []>} : vector<4x16xbf16>, vector<16x32xbf16>, vector<4x32xf32> -> vector<4x32xf32>
    %121 = arith.addf %95, %120 : vector<4x32xf32>
    %122 = vector.extract_strided_slice %87 {offsets = [0, 16], sizes = [4, 16], strides = [1, 1]} : vector<4x32xf32> to vector<4x16xf32>
    %123 = arith.truncf %122 : vector<4x16xf32> to vector<4x16xbf16>
    %124 = vector.extract_strided_slice %91 {offsets = [0, 16], sizes = [32, 16], strides = [1, 1]} : vector<32x32xf32> to vector<32x16xf32>
    %125 = arith.truncf %124 : vector<32x16xf32> to vector<32x16xbf16>
    "tpu.trace_start"() <{level = 10 : i32, message = "md,nd->mn"}> : () -> ()
    %cst_48 = arith.constant dense<0.000000e+00> : vector<4x32xf32>
    %126 = tpu.matmul %123, %125, %cst_48 {dimension_numbers = #tpu.dot_dimension_numbers<[1], [1], [0], [0], [0, 0, 1, 0], [], []>} : vector<4x16xbf16>, vector<32x16xbf16>, vector<4x32xf32> -> vector<4x32xf32>
    "tpu.trace_stop"() : () -> ()
    %cst_49 = arith.constant 2.500000e-01 : f32
    %127 = vector.broadcast %cst_49 : f32 to vector<4x32xf32>
    %128 = arith.mulf %126, %127 : vector<4x32xf32>
    %129 = arith.addf %128, %6 : vector<4x32xf32>
    %cst_50 = arith.constant dense<0xFF800000> : vector<4xf32>
    %130 = vector.multi_reduction <maximumf>, %129, %cst_50 [1] : vector<4x32xf32> to vector<4xf32>
    %131 = vector.shape_cast %130 : vector<4xf32> to vector<4x1xf32>
    %132 = vector.broadcast %131 : vector<4x1xf32> to vector<4x32xf32>
    %133 = arith.subf %129, %132 : vector<4x32xf32>
    %134 = math.exp %133 : vector<4x32xf32>
    %cst_51 = arith.constant dense<0.000000e+00> : vector<4xf32>
    %135 = vector.multi_reduction <add>, %134, %cst_51 [1] : vector<4x32xf32> to vector<4xf32>
    %136 = vector.shape_cast %135 : vector<4xf32> to vector<4x1xf32>
    %137 = tpu.reciprocal %136 {approx = true} : vector<4x1xf32> -> vector<4x1xf32>
    %138 = vector.broadcast %137 : vector<4x1xf32> to vector<4x32xf32>
    %139 = arith.mulf %134, %138 : vector<4x32xf32>
    %140 = arith.truncf %139 : vector<4x32xf32> to vector<4x32xbf16>
    %141 = vector.extract_strided_slice %92 {offsets = [0, 16], sizes = [32, 16], strides = [1, 1]} : vector<32x32xf32> to vector<32x16xf32>
    %142 = arith.truncf %141 : vector<32x16xf32> to vector<32x16xbf16>
    %cst_52 = arith.constant dense<0.000000e+00> : vector<4x16xf32>
    %143 = tpu.matmul %140, %142, %cst_52 {dimension_numbers = #tpu.dot_dimension_numbers<[1], [0], [0], [1], [0, 0, 1, 1], [], []>} : vector<4x32xbf16>, vector<32x16xbf16>, vector<4x16xf32> -> vector<4x16xf32>
    %144 = arith.truncf %143 : vector<4x16xf32> to vector<4x16xbf16>
    %145 = vector.extract_strided_slice %94 {offsets = [16, 0], sizes = [16, 32], strides = [1, 1]} : vector<32x32xbf16> to vector<16x32xbf16>
    %cst_53 = arith.constant dense<0.000000e+00> : vector<4x32xf32>
    %146 = tpu.matmul %144, %145, %cst_53 {dimension_numbers = #tpu.dot_dimension_numbers<[1], [0], [0], [1], [0, 0, 1, 1], [], []>} : vector<4x16xbf16>, vector<16x32xbf16>, vector<4x32xf32> -> vector<4x32xf32>
    %147 = arith.addf %121, %146 : vector<4x32xf32>
    %148 = arith.addf %82, %147 : vector<4x32xf32>
    %c1_54 = arith.constant 1 : index
    %c0_55 = arith.constant 0 : index
    %c0_56 = arith.constant 0 : index
    %149 = vector.load %arg6[%c1_54, %c0_55, %c0_56] : memref<14x32x32xbf16, #tpu.memory_space<vmem>>, vector<1x32x32xbf16>
    %150 = vector.shape_cast %149 : vector<1x32x32xbf16> to vector<32x32xbf16>
    %151 = arith.truncf %148 : vector<4x32xf32> to vector<4x32xbf16>
    %cst_57 = arith.constant dense<0.000000e+00> : vector<4x32xf32>
    %152 = tpu.matmul %151, %150, %cst_57 {dimension_numbers = #tpu.dot_dimension_numbers<[1], [0], [0], [1], [0, 0, 1, 1], [], []>} : vector<4x32xbf16>, vector<32x32xbf16>, vector<4x32xf32> -> vector<4x32xf32>
    %153 = vector.extract_strided_slice %0 {offsets = [1, 0], sizes = [1, 32], strides = [1, 1]} : vector<13x32xf32> to vector<1x32xf32>
    %154 = vector.broadcast %153 : vector<1x32xf32> to vector<4x32xf32>
    %155 = arith.addf %152, %154 : vector<4x32xf32>
    %cst_58 = arith.constant 0.000000e+00 : f32
    %156 = vector.broadcast %cst_58 : f32 to vector<4x32xf32>
    %157 = arith.maximumf %155, %156 : vector<4x32xf32>
    %158 = arith.addf %148, %157 : vector<4x32xf32>
    %c2 = arith.constant 2 : index
    %c0_59 = arith.constant 0 : index
    %c0_60 = arith.constant 0 : index
    %159 = vector.load %arg7[%c2, %c0_59, %c0_60] : memref<3x32x96xbf16, #tpu.memory_space<vmem>>, vector<1x32x96xbf16>
    %160 = vector.shape_cast %159 : vector<1x32x96xbf16> to vector<32x96xbf16>
    %161 = arith.truncf %158 : vector<4x32xf32> to vector<4x32xbf16>
    %cst_61 = arith.constant dense<0.000000e+00> : vector<4x96xf32>
    %162 = tpu.matmul %161, %160, %cst_61 {dimension_numbers = #tpu.dot_dimension_numbers<[1], [0], [0], [1], [0, 0, 1, 1], [], []>} : vector<4x32xbf16>, vector<32x96xbf16>, vector<4x96xf32> -> vector<4x96xf32>
    %163 = vector.extract_strided_slice %162 {offsets = [0, 0], sizes = [4, 32], strides = [1, 1]} : vector<4x96xf32> to vector<4x32xf32>
    %164 = vector.extract_strided_slice %162 {offsets = [0, 32], sizes = [4, 32], strides = [1, 1]} : vector<4x96xf32> to vector<4x32xf32>
    %165 = vector.extract_strided_slice %162 {offsets = [0, 64], sizes = [4, 32], strides = [1, 1]} : vector<4x96xf32> to vector<4x32xf32>
    %c5 = arith.constant 5 : index
    %c0_62 = arith.constant 0 : index
    %c0_63 = arith.constant 0 : index
    %166 = vector.load %arg6[%c5, %c0_62, %c0_63] : memref<14x32x32xbf16, #tpu.memory_space<vmem>>, vector<1x32x32xbf16>
    %167 = vector.shape_cast %166 : vector<1x32x32xbf16> to vector<32x32xbf16>
    %cst_64 = arith.constant 0.000000e+00 : f32
    %168 = vector.broadcast %cst_64 : f32 to vector<4x32xf32>
    %169 = vector.extract_strided_slice %163 {offsets = [0, 0], sizes = [4, 16], strides = [1, 1]} : vector<4x32xf32> to vector<4x16xf32>
    %170 = arith.truncf %169 : vector<4x16xf32> to vector<4x16xbf16>
    %171 = vector.extract_strided_slice %164 {offsets = [0, 0], sizes = [4, 16], strides = [1, 1]} : vector<4x32xf32> to vector<4x16xf32>
    %172 = arith.truncf %171 : vector<4x16xf32> to vector<4x16xbf16>
    "tpu.trace_start"() <{level = 10 : i32, message = "md,nd->mn"}> : () -> ()
    %cst_65 = arith.constant dense<0.000000e+00> : vector<4x4xf32>
    %173 = tpu.matmul %170, %172, %cst_65 {dimension_numbers = #tpu.dot_dimension_numbers<[1], [1], [0], [0], [0, 0, 1, 0], [], []>} : vector<4x16xbf16>, vector<4x16xbf16>, vector<4x4xf32> -> vector<4x4xf32>
    "tpu.trace_stop"() : () -> ()
    %cst_66 = arith.constant 2.500000e-01 : f32
    %174 = vector.broadcast %cst_66 : f32 to vector<4x4xf32>
    %175 = arith.mulf %173, %174 : vector<4x4xf32>
    %176 = arith.addf %175, %7 : vector<4x4xf32>
    %cst_67 = arith.constant dense<0xFF800000> : vector<4xf32>
    %177 = vector.multi_reduction <maximumf>, %176, %cst_67 [1] : vector<4x4xf32> to vector<4xf32>
    %178 = vector.shape_cast %177 : vector<4xf32> to vector<4x1xf32>
    %179 = vector.broadcast %178 : vector<4x1xf32> to vector<4x4xf32>
    %180 = arith.subf %176, %179 : vector<4x4xf32>
    %181 = math.exp %180 : vector<4x4xf32>
    %cst_68 = arith.constant dense<0.000000e+00> : vector<4xf32>
    %182 = vector.multi_reduction <add>, %181, %cst_68 [1] : vector<4x4xf32> to vector<4xf32>
    %183 = vector.shape_cast %182 : vector<4xf32> to vector<4x1xf32>
    %184 = tpu.reciprocal %183 {approx = true} : vector<4x1xf32> -> vector<4x1xf32>
    %185 = vector.broadcast %184 : vector<4x1xf32> to vector<4x4xf32>
    %186 = arith.mulf %181, %185 : vector<4x4xf32>
    %187 = arith.truncf %186 : vector<4x4xf32> to vector<4x4xbf16>
    %188 = vector.extract_strided_slice %165 {offsets = [0, 0], sizes = [4, 16], strides = [1, 1]} : vector<4x32xf32> to vector<4x16xf32>
    %189 = arith.truncf %188 : vector<4x16xf32> to vector<4x16xbf16>
    %cst_69 = arith.constant dense<0.000000e+00> : vector<4x16xf32>
    %190 = tpu.matmul %187, %189, %cst_69 {dimension_numbers = #tpu.dot_dimension_numbers<[1], [0], [0], [1], [0, 0, 1, 1], [], []>} : vector<4x4xbf16>, vector<4x16xbf16>, vector<4x16xf32> -> vector<4x16xf32>
    %191 = arith.truncf %190 : vector<4x16xf32> to vector<4x16xbf16>
    %192 = vector.extract_strided_slice %167 {offsets = [0, 0], sizes = [16, 32], strides = [1, 1]} : vector<32x32xbf16> to vector<16x32xbf16>
    %cst_70 = arith.constant dense<0.000000e+00> : vector<4x32xf32>
    %193 = tpu.matmul %191, %192, %cst_70 {dimension_numbers = #tpu.dot_dimension_numbers<[1], [0], [0], [1], [0, 0, 1, 1], [], []>} : vector<4x16xbf16>, vector<16x32xbf16>, vector<4x32xf32> -> vector<4x32xf32>
    %194 = arith.addf %168, %193 : vector<4x32xf32>
    %195 = vector.extract_strided_slice %163 {offsets = [0, 16], sizes = [4, 16], strides = [1, 1]} : vector<4x32xf32> to vector<4x16xf32>
    %196 = arith.truncf %195 : vector<4x16xf32> to vector<4x16xbf16>
    %197 = vector.extract_strided_slice %164 {offsets = [0, 16], sizes = [4, 16], strides = [1, 1]} : vector<4x32xf32> to vector<4x16xf32>
    %198 = arith.truncf %197 : vector<4x16xf32> to vector<4x16xbf16>
    "tpu.trace_start"() <{level = 10 : i32, message = "md,nd->mn"}> : () -> ()
    %cst_71 = arith.constant dense<0.000000e+00> : vector<4x4xf32>
    %199 = tpu.matmul %196, %198, %cst_71 {dimension_numbers = #tpu.dot_dimension_numbers<[1], [1], [0], [0], [0, 0, 1, 0], [], []>} : vector<4x16xbf16>, vector<4x16xbf16>, vector<4x4xf32> -> vector<4x4xf32>
    "tpu.trace_stop"() : () -> ()
    %cst_72 = arith.constant 2.500000e-01 : f32
    %200 = vector.broadcast %cst_72 : f32 to vector<4x4xf32>
    %201 = arith.mulf %199, %200 : vector<4x4xf32>
    %202 = arith.addf %201, %7 : vector<4x4xf32>
    %cst_73 = arith.constant dense<0xFF800000> : vector<4xf32>
    %203 = vector.multi_reduction <maximumf>, %202, %cst_73 [1] : vector<4x4xf32> to vector<4xf32>
    %204 = vector.shape_cast %203 : vector<4xf32> to vector<4x1xf32>
    %205 = vector.broadcast %204 : vector<4x1xf32> to vector<4x4xf32>
    %206 = arith.subf %202, %205 : vector<4x4xf32>
    %207 = math.exp %206 : vector<4x4xf32>
    %cst_74 = arith.constant dense<0.000000e+00> : vector<4xf32>
    %208 = vector.multi_reduction <add>, %207, %cst_74 [1] : vector<4x4xf32> to vector<4xf32>
    %209 = vector.shape_cast %208 : vector<4xf32> to vector<4x1xf32>
    %210 = tpu.reciprocal %209 {approx = true} : vector<4x1xf32> -> vector<4x1xf32>
    %211 = vector.broadcast %210 : vector<4x1xf32> to vector<4x4xf32>
    %212 = arith.mulf %207, %211 : vector<4x4xf32>
    %213 = arith.truncf %212 : vector<4x4xf32> to vector<4x4xbf16>
    %214 = vector.extract_strided_slice %165 {offsets = [0, 16], sizes = [4, 16], strides = [1, 1]} : vector<4x32xf32> to vector<4x16xf32>
    %215 = arith.truncf %214 : vector<4x16xf32> to vector<4x16xbf16>
    %cst_75 = arith.constant dense<0.000000e+00> : vector<4x16xf32>
    %216 = tpu.matmul %213, %215, %cst_75 {dimension_numbers = #tpu.dot_dimension_numbers<[1], [0], [0], [1], [0, 0, 1, 1], [], []>} : vector<4x4xbf16>, vector<4x16xbf16>, vector<4x16xf32> -> vector<4x16xf32>
    %217 = arith.truncf %216 : vector<4x16xf32> to vector<4x16xbf16>
    %218 = vector.extract_strided_slice %167 {offsets = [16, 0], sizes = [16, 32], strides = [1, 1]} : vector<32x32xbf16> to vector<16x32xbf16>
    %cst_76 = arith.constant dense<0.000000e+00> : vector<4x32xf32>
    %219 = tpu.matmul %217, %218, %cst_76 {dimension_numbers = #tpu.dot_dimension_numbers<[1], [0], [0], [1], [0, 0, 1, 1], [], []>} : vector<4x16xbf16>, vector<16x32xbf16>, vector<4x32xf32> -> vector<4x32xf32>
    %220 = arith.addf %194, %219 : vector<4x32xf32>
    %221 = arith.addf %158, %220 : vector<4x32xf32>
    %c2_77 = arith.constant 2 : index
    %c0_78 = arith.constant 0 : index
    %c0_79 = arith.constant 0 : index
    %222 = vector.load %arg6[%c2_77, %c0_78, %c0_79] : memref<14x32x32xbf16, #tpu.memory_space<vmem>>, vector<1x32x32xbf16>
    %223 = vector.shape_cast %222 : vector<1x32x32xbf16> to vector<32x32xbf16>
    %224 = arith.truncf %221 : vector<4x32xf32> to vector<4x32xbf16>
    %cst_80 = arith.constant dense<0.000000e+00> : vector<4x32xf32>
    %225 = tpu.matmul %224, %223, %cst_80 {dimension_numbers = #tpu.dot_dimension_numbers<[1], [0], [0], [1], [0, 0, 1, 1], [], []>} : vector<4x32xbf16>, vector<32x32xbf16>, vector<4x32xf32> -> vector<4x32xf32>
    %226 = vector.extract_strided_slice %0 {offsets = [2, 0], sizes = [1, 32], strides = [1, 1]} : vector<13x32xf32> to vector<1x32xf32>
    %227 = vector.broadcast %226 : vector<1x32xf32> to vector<4x32xf32>
    %228 = arith.addf %225, %227 : vector<4x32xf32>
    %cst_81 = arith.constant 0.000000e+00 : f32
    %229 = vector.broadcast %cst_81 : f32 to vector<4x32xf32>
    %230 = arith.maximumf %228, %229 : vector<4x32xf32>
    %231 = arith.addf %221, %230 : vector<4x32xf32>
    %232 = arith.truncf %231 : vector<4x32xf32> to vector<4x32xbf16>
    %c6 = arith.constant 6 : index
    %c0_82 = arith.constant 0 : index
    %c0_83 = arith.constant 0 : index
    %233 = vector.load %arg6[%c6, %c0_82, %c0_83] : memref<14x32x32xbf16, #tpu.memory_space<vmem>>, vector<1x32x32xbf16>
    %234 = vector.shape_cast %233 : vector<1x32x32xbf16> to vector<32x32xbf16>
    %cst_84 = arith.constant dense<0.000000e+00> : vector<4x32xf32>
    %235 = tpu.matmul %232, %234, %cst_84 {dimension_numbers = #tpu.dot_dimension_numbers<[1], [0], [0], [1], [0, 0, 1, 1], [], []>} : vector<4x32xbf16>, vector<32x32xbf16>, vector<4x32xf32> -> vector<4x32xf32>
    %236 = vector.extract_strided_slice %0 {offsets = [3, 0], sizes = [1, 32], strides = [1, 1]} : vector<13x32xf32> to vector<1x32xf32>
    %237 = vector.broadcast %236 : vector<1x32xf32> to vector<4x32xf32>
    %238 = arith.addf %235, %237 : vector<4x32xf32>
    %c0_85 = arith.constant 0 : index
    %c0_86 = arith.constant 0 : index
    %c0_87 = arith.constant 0 : index
    %239 = vector.load %arg9[%c0_85, %c0_86, %c0_87] : memref<1x4x32xf32, #tpu.memory_space<vmem>>, vector<1x4x32xf32>
    %240 = vector.shape_cast %239 : vector<1x4x32xf32> to vector<4x32xf32>
    %241 = vector.shape_cast %238 : vector<4x32xf32> to vector<1x4x32xf32>
    tpu.vector_store %arg9[%c0_85, %c0_86, %c0_87], %241 {strides = array<i32>} : memref<1x4x32xf32, #tpu.memory_space<vmem>>, vector<1x4x32xf32>,
    %242 = arith.truncf %238 : vector<4x32xf32> to vector<4x32xbf16>
    %c7 = arith.constant 7 : index
    %c0_88 = arith.constant 0 : index
    %c0_89 = arith.constant 0 : index
    %243 = vector.load %arg6[%c7, %c0_88, %c0_89] : memref<14x32x32xbf16, #tpu.memory_space<vmem>>, vector<1x32x32xbf16>
    %244 = vector.shape_cast %243 : vector<1x32x32xbf16> to vector<32x32xbf16>
    %cst_90 = arith.constant dense<0.000000e+00> : vector<4x32xf32>
    %245 = tpu.matmul %242, %244, %cst_90 {dimension_numbers = #tpu.dot_dimension_numbers<[1], [0], [0], [1], [0, 0, 1, 1], [], []>} : vector<4x32xbf16>, vector<32x32xbf16>, vector<4x32xf32> -> vector<4x32xf32>
    %246 = vector.extract_strided_slice %0 {offsets = [4, 0], sizes = [1, 32], strides = [1, 1]} : vector<13x32xf32> to vector<1x32xf32>
    %247 = vector.broadcast %246 : vector<1x32xf32> to vector<4x32xf32>
    %248 = arith.addf %245, %247 : vector<4x32xf32>
    %249 = vector.extract_strided_slice %248 {offsets = [0, 0], sizes = [4, 16], strides = [1, 1]} : vector<4x32xf32> to vector<4x16xf32>
    %c0_91 = arith.constant 0 : index
    %c0_92 = arith.constant 0 : index
    %c0_93 = arith.constant 0 : index
    %250 = vector.load %arg10[%c0_91, %c0_92, %c0_93] : memref<1x4x16xf32, #tpu.memory_space<vmem>>, vector<1x4x16xf32>
    %251 = vector.shape_cast %250 : vector<1x4x16xf32> to vector<4x16xf32>
    %252 = vector.shape_cast %249 : vector<4x16xf32> to vector<1x4x16xf32>
    tpu.vector_store %arg10[%c0_91, %c0_92, %c0_93], %252 {strides = array<i32>} : memref<1x4x16xf32, #tpu.memory_space<vmem>>, vector<1x4x16xf32>,
    %c0_94 = arith.constant 0 : index
    %c0_95 = arith.constant 0 : index
    %c0_96 = arith.constant 0 : index
    %253 = vector.load %arg2[%c0_94, %c0_95, %c0_96] : memref<1x4x32xf32, #tpu.memory_space<vmem>>, vector<1x4x32xf32>
    %254 = vector.shape_cast %253 : vector<1x4x32xf32> to vector<4x32xf32>
    %255 = arith.addf %238, %254 : vector<4x32xf32>
    %256 = arith.truncf %255 : vector<4x32xf32> to vector<4x32xbf16>
    %c8 = arith.constant 8 : index
    %c0_97 = arith.constant 0 : index
    %c0_98 = arith.constant 0 : index
    %257 = vector.load %arg6[%c8, %c0_97, %c0_98] : memref<14x32x32xbf16, #tpu.memory_space<vmem>>, vector<1x32x32xbf16>
    %258 = vector.shape_cast %257 : vector<1x32x32xbf16> to vector<32x32xbf16>
    %cst_99 = arith.constant dense<0.000000e+00> : vector<4x32xf32>
    %259 = tpu.matmul %256, %258, %cst_99 {dimension_numbers = #tpu.dot_dimension_numbers<[1], [0], [0], [1], [0, 0, 1, 1], [], []>} : vector<4x32xbf16>, vector<32x32xbf16>, vector<4x32xf32> -> vector<4x32xf32>
    %260 = vector.extract_strided_slice %0 {offsets = [6, 0], sizes = [1, 32], strides = [1, 1]} : vector<13x32xf32> to vector<1x32xf32>
    %261 = vector.broadcast %260 : vector<1x32xf32> to vector<4x32xf32>
    %262 = arith.addf %259, %261 : vector<4x32xf32>
    %c9 = arith.constant 9 : index
    %c0_100 = arith.constant 0 : index
    %c0_101 = arith.constant 0 : index
    %263 = vector.load %arg6[%c9, %c0_100, %c0_101] : memref<14x32x32xbf16, #tpu.memory_space<vmem>>, vector<1x32x32xbf16>
    %264 = vector.shape_cast %263 : vector<1x32x32xbf16> to vector<32x32xbf16>
    %cst_102 = arith.constant dense<0.000000e+00> : vector<4x32xf32>
    %265 = tpu.matmul %256, %264, %cst_102 {dimension_numbers = #tpu.dot_dimension_numbers<[1], [0], [0], [1], [0, 0, 1, 1], [], []>} : vector<4x32xbf16>, vector<32x32xbf16>, vector<4x32xf32> -> vector<4x32xf32>
    %266 = vector.extract_strided_slice %0 {offsets = [7, 0], sizes = [1, 32], strides = [1, 1]} : vector<13x32xf32> to vector<1x32xf32>
    %267 = vector.broadcast %266 : vector<1x32xf32> to vector<4x32xf32>
    %268 = arith.addf %265, %267 : vector<4x32xf32>
    %c10 = arith.constant 10 : index
    %c0_103 = arith.constant 0 : index
    %c0_104 = arith.constant 0 : index
    %269 = vector.load %arg6[%c10, %c0_103, %c0_104] : memref<14x32x32xbf16, #tpu.memory_space<vmem>>, vector<1x32x32xbf16>
    %270 = vector.shape_cast %269 : vector<1x32x32xbf16> to vector<32x32xbf16>
    %cst_105 = arith.constant dense<0.000000e+00> : vector<4x32xf32>
    %271 = tpu.matmul %256, %270, %cst_105 {dimension_numbers = #tpu.dot_dimension_numbers<[1], [0], [0], [1], [0, 0, 1, 1], [], []>} : vector<4x32xbf16>, vector<32x32xbf16>, vector<4x32xf32> -> vector<4x32xf32>
    %272 = vector.extract_strided_slice %0 {offsets = [8, 0], sizes = [1, 32], strides = [1, 1]} : vector<13x32xf32> to vector<1x32xf32>
    %273 = vector.broadcast %272 : vector<1x32xf32> to vector<4x32xf32>
    %274 = arith.addf %271, %273 : vector<4x32xf32>
    %c11 = arith.constant 11 : index
    %c0_106 = arith.constant 0 : index
    %c0_107 = arith.constant 0 : index
    %275 = vector.load %arg6[%c11, %c0_106, %c0_107] : memref<14x32x32xbf16, #tpu.memory_space<vmem>>, vector<1x32x32xbf16>
    %276 = vector.shape_cast %275 : vector<1x32x32xbf16> to vector<32x32xbf16>
    %c12 = arith.constant 12 : index
    %c0_108 = arith.constant 0 : index
    %c0_109 = arith.constant 0 : index
    %277 = vector.load %arg6[%c12, %c0_108, %c0_109] : memref<14x32x32xbf16, #tpu.memory_space<vmem>>, vector<1x32x32xbf16>
    %278 = vector.shape_cast %277 : vector<1x32x32xbf16> to vector<32x32xbf16>
    %c13 = arith.constant 13 : index
    %c0_110 = arith.constant 0 : index
    %c0_111 = arith.constant 0 : index
    %279 = vector.load %arg6[%c13, %c0_110, %c0_111] : memref<14x32x32xbf16, #tpu.memory_space<vmem>>, vector<1x32x32xbf16>
    %280 = vector.shape_cast %279 : vector<1x32x32xbf16> to vector<32x32xbf16>
    %281 = vector.extract_strided_slice %0 {offsets = [9, 0], sizes = [1, 32], strides = [1, 1]} : vector<13x32xf32> to vector<1x32xf32>
    %282 = vector.extract_strided_slice %0 {offsets = [10, 0], sizes = [1, 32], strides = [1, 1]} : vector<13x32xf32> to vector<1x32xf32>
    %283 = vector.extract_strided_slice %0 {offsets = [11, 0], sizes = [1, 32], strides = [1, 1]} : vector<13x32xf32> to vector<1x32xf32>
    %284 = vector.extract_strided_slice %0 {offsets = [12, 0], sizes = [1, 32], strides = [1, 1]} : vector<13x32xf32> to vector<1x32xf32>
    %285 = arith.truncf %284 : vector<1x32xf32> to vector<1x32xbf16>
    %cst_112 = arith.constant dense<0.000000e+00> : vector<1x32xf32>
    %286 = tpu.matmul %285, %276, %cst_112 {dimension_numbers = #tpu.dot_dimension_numbers<[1], [0], [0], [1], [0, 0, 1, 1], [], []>} : vector<1x32xbf16>, vector<32x32xbf16>, vector<1x32xf32> -> vector<1x32xf32>
    %287 = arith.addf %286, %281 : vector<1x32xf32>
    %cst_113 = arith.constant dense<0.000000e+00> : vector<1x32xf32>
    %288 = tpu.matmul %285, %278, %cst_113 {dimension_numbers = #tpu.dot_dimension_numbers<[1], [0], [0], [1], [0, 0, 1, 1], [], []>} : vector<1x32xbf16>, vector<32x32xbf16>, vector<1x32xf32> -> vector<1x32xf32>
    %289 = arith.addf %288, %282 : vector<1x32xf32>
    %cst_114 = arith.constant dense<0.000000e+00> : vector<1x32xf32>
    %290 = tpu.matmul %285, %280, %cst_114 {dimension_numbers = #tpu.dot_dimension_numbers<[1], [0], [0], [1], [0, 0, 1, 1], [], []>} : vector<1x32xbf16>, vector<32x32xbf16>, vector<1x32xf32> -> vector<1x32xf32>
    %291 = arith.addf %290, %283 : vector<1x32xf32>
    %292 = vector.extract_strided_slice %262 {offsets = [0, 0], sizes = [1, 32], strides = [1, 1]} : vector<4x32xf32> to vector<1x32xf32>
    %293 = arith.addf %292, %287 : vector<1x32xf32>
    %294 = arith.negf %293 : vector<1x32xf32>
    %295 = math.exp %294 : vector<1x32xf32>
    %cst_115 = arith.constant 1.000000e+00 : f32
    %296 = vector.broadcast %cst_115 : f32 to vector<1x32xf32>
    %297 = arith.addf %296, %295 : vector<1x32xf32>
    %298 = arith.divf %296, %297 : vector<1x32xf32>
    %299 = vector.extract_strided_slice %268 {offsets = [0, 0], sizes = [1, 32], strides = [1, 1]} : vector<4x32xf32> to vector<1x32xf32>
    %300 = arith.addf %299, %289 : vector<1x32xf32>
    %301 = arith.negf %300 : vector<1x32xf32>
    %302 = math.exp %301 : vector<1x32xf32>
    %cst_116 = arith.constant 1.000000e+00 : f32
    %303 = vector.broadcast %cst_116 : f32 to vector<1x32xf32>
    %304 = arith.addf %303, %302 : vector<1x32xf32>
    %305 = arith.divf %303, %304 : vector<1x32xf32>
    %306 = vector.extract_strided_slice %274 {offsets = [0, 0], sizes = [1, 32], strides = [1, 1]} : vector<4x32xf32> to vector<1x32xf32>
    %307 = arith.mulf %298, %291 : vector<1x32xf32>
    %308 = arith.addf %306, %307 : vector<1x32xf32>
    %309 = math.tanh %308 : vector<1x32xf32>
    %cst_117 = arith.constant 1.000000e+00 : f32
    %310 = vector.broadcast %cst_117 : f32 to vector<1x32xf32>
    %311 = arith.subf %310, %305 : vector<1x32xf32>
    %312 = arith.mulf %311, %309 : vector<1x32xf32>
    %313 = arith.mulf %305, %284 : vector<1x32xf32>
    %314 = arith.addf %312, %313 : vector<1x32xf32>
    %315 = arith.truncf %314 : vector<1x32xf32> to vector<1x32xbf16>
    %cst_118 = arith.constant dense<0.000000e+00> : vector<1x32xf32>
    %316 = tpu.matmul %315, %276, %cst_118 {dimension_numbers = #tpu.dot_dimension_numbers<[1], [0], [0], [1], [0, 0, 1, 1], [], []>} : vector<1x32xbf16>, vector<32x32xbf16>, vector<1x32xf32> -> vector<1x32xf32>
    %317 = arith.addf %316, %281 : vector<1x32xf32>
    %cst_119 = arith.constant dense<0.000000e+00> : vector<1x32xf32>
    %318 = tpu.matmul %315, %278, %cst_119 {dimension_numbers = #tpu.dot_dimension_numbers<[1], [0], [0], [1], [0, 0, 1, 1], [], []>} : vector<1x32xbf16>, vector<32x32xbf16>, vector<1x32xf32> -> vector<1x32xf32>
    %319 = arith.addf %318, %282 : vector<1x32xf32>
    %cst_120 = arith.constant dense<0.000000e+00> : vector<1x32xf32>
    %320 = tpu.matmul %315, %280, %cst_120 {dimension_numbers = #tpu.dot_dimension_numbers<[1], [0], [0], [1], [0, 0, 1, 1], [], []>} : vector<1x32xbf16>, vector<32x32xbf16>, vector<1x32xf32> -> vector<1x32xf32>
    %321 = arith.addf %320, %283 : vector<1x32xf32>
    %322 = vector.extract_strided_slice %262 {offsets = [1, 0], sizes = [1, 32], strides = [1, 1]} : vector<4x32xf32> to vector<1x32xf32>
    %323 = arith.addf %322, %317 : vector<1x32xf32>
    %324 = arith.negf %323 : vector<1x32xf32>
    %325 = math.exp %324 : vector<1x32xf32>
    %cst_121 = arith.constant 1.000000e+00 : f32
    %326 = vector.broadcast %cst_121 : f32 to vector<1x32xf32>
    %327 = arith.addf %326, %325 : vector<1x32xf32>
    %328 = arith.divf %326, %327 : vector<1x32xf32>
    %329 = vector.extract_strided_slice %268 {offsets = [1, 0], sizes = [1, 32], strides = [1, 1]} : vector<4x32xf32> to vector<1x32xf32>
    %330 = arith.addf %329, %319 : vector<1x32xf32>
    %331 = arith.negf %330 : vector<1x32xf32>
    %332 = math.exp %331 : vector<1x32xf32>
    %cst_122 = arith.constant 1.000000e+00 : f32
    %333 = vector.broadcast %cst_122 : f32 to vector<1x32xf32>
    %334 = arith.addf %333, %332 : vector<1x32xf32>
    %335 = arith.divf %333, %334 : vector<1x32xf32>
    %336 = vector.extract_strided_slice %274 {offsets = [1, 0], sizes = [1, 32], strides = [1, 1]} : vector<4x32xf32> to vector<1x32xf32>
    %337 = arith.mulf %328, %321 : vector<1x32xf32>
    %338 = arith.addf %336, %337 : vector<1x32xf32>
    %339 = math.tanh %338 : vector<1x32xf32>
    %cst_123 = arith.constant 1.000000e+00 : f32
    %340 = vector.broadcast %cst_123 : f32 to vector<1x32xf32>
    %341 = arith.subf %340, %335 : vector<1x32xf32>
    %342 = arith.mulf %341, %339 : vector<1x32xf32>
    %343 = arith.mulf %335, %314 : vector<1x32xf32>
    %344 = arith.addf %342, %343 : vector<1x32xf32>
    %345 = arith.truncf %344 : vector<1x32xf32> to vector<1x32xbf16>
    %cst_124 = arith.constant dense<0.000000e+00> : vector<1x32xf32>
    %346 = tpu.matmul %345, %276, %cst_124 {dimension_numbers = #tpu.dot_dimension_numbers<[1], [0], [0], [1], [0, 0, 1, 1], [], []>} : vector<1x32xbf16>, vector<32x32xbf16>, vector<1x32xf32> -> vector<1x32xf32>
    %347 = arith.addf %346, %281 : vector<1x32xf32>
    %cst_125 = arith.constant dense<0.000000e+00> : vector<1x32xf32>
    %348 = tpu.matmul %345, %278, %cst_125 {dimension_numbers = #tpu.dot_dimension_numbers<[1], [0], [0], [1], [0, 0, 1, 1], [], []>} : vector<1x32xbf16>, vector<32x32xbf16>, vector<1x32xf32> -> vector<1x32xf32>
    %349 = arith.addf %348, %282 : vector<1x32xf32>
    %cst_126 = arith.constant dense<0.000000e+00> : vector<1x32xf32>
    %350 = tpu.matmul %345, %280, %cst_126 {dimension_numbers = #tpu.dot_dimension_numbers<[1], [0], [0], [1], [0, 0, 1, 1], [], []>} : vector<1x32xbf16>, vector<32x32xbf16>, vector<1x32xf32> -> vector<1x32xf32>
    %351 = arith.addf %350, %283 : vector<1x32xf32>
    %352 = vector.extract_strided_slice %262 {offsets = [2, 0], sizes = [1, 32], strides = [1, 1]} : vector<4x32xf32> to vector<1x32xf32>
    %353 = arith.addf %352, %347 : vector<1x32xf32>
    %354 = arith.negf %353 : vector<1x32xf32>
    %355 = math.exp %354 : vector<1x32xf32>
    %cst_127 = arith.constant 1.000000e+00 : f32
    %356 = vector.broadcast %cst_127 : f32 to vector<1x32xf32>
    %357 = arith.addf %356, %355 : vector<1x32xf32>
    %358 = arith.divf %356, %357 : vector<1x32xf32>
    %359 = vector.extract_strided_slice %268 {offsets = [2, 0], sizes = [1, 32], strides = [1, 1]} : vector<4x32xf32> to vector<1x32xf32>
    %360 = arith.addf %359, %349 : vector<1x32xf32>
    %361 = arith.negf %360 : vector<1x32xf32>
    %362 = math.exp %361 : vector<1x32xf32>
    %cst_128 = arith.constant 1.000000e+00 : f32
    %363 = vector.broadcast %cst_128 : f32 to vector<1x32xf32>
    %364 = arith.addf %363, %362 : vector<1x32xf32>
    %365 = arith.divf %363, %364 : vector<1x32xf32>
    %366 = vector.extract_strided_slice %274 {offsets = [2, 0], sizes = [1, 32], strides = [1, 1]} : vector<4x32xf32> to vector<1x32xf32>
    %367 = arith.mulf %358, %351 : vector<1x32xf32>
    %368 = arith.addf %366, %367 : vector<1x32xf32>
    %369 = math.tanh %368 : vector<1x32xf32>
    %cst_129 = arith.constant 1.000000e+00 : f32
    %370 = vector.broadcast %cst_129 : f32 to vector<1x32xf32>
    %371 = arith.subf %370, %365 : vector<1x32xf32>
    %372 = arith.mulf %371, %369 : vector<1x32xf32>
    %373 = arith.mulf %365, %344 : vector<1x32xf32>
    %374 = arith.addf %372, %373 : vector<1x32xf32>
    %375 = arith.truncf %374 : vector<1x32xf32> to vector<1x32xbf16>
    %cst_130 = arith.constant dense<0.000000e+00> : vector<1x32xf32>
    %376 = tpu.matmul %375, %276, %cst_130 {dimension_numbers = #tpu.dot_dimension_numbers<[1], [0], [0], [1], [0, 0, 1, 1], [], []>} : vector<1x32xbf16>, vector<32x32xbf16>, vector<1x32xf32> -> vector<1x32xf32>
    %377 = arith.addf %376, %281 : vector<1x32xf32>
    %cst_131 = arith.constant dense<0.000000e+00> : vector<1x32xf32>
    %378 = tpu.matmul %375, %278, %cst_131 {dimension_numbers = #tpu.dot_dimension_numbers<[1], [0], [0], [1], [0, 0, 1, 1], [], []>} : vector<1x32xbf16>, vector<32x32xbf16>, vector<1x32xf32> -> vector<1x32xf32>
    %379 = arith.addf %378, %282 : vector<1x32xf32>
    %cst_132 = arith.constant dense<0.000000e+00> : vector<1x32xf32>
    %380 = tpu.matmul %375, %280, %cst_132 {dimension_numbers = #tpu.dot_dimension_numbers<[1], [0], [0], [1], [0, 0, 1, 1], [], []>} : vector<1x32xbf16>, vector<32x32xbf16>, vector<1x32xf32> -> vector<1x32xf32>
    %381 = arith.addf %380, %283 : vector<1x32xf32>
    %382 = vector.extract_strided_slice %262 {offsets = [3, 0], sizes = [1, 32], strides = [1, 1]} : vector<4x32xf32> to vector<1x32xf32>
    %383 = arith.addf %382, %377 : vector<1x32xf32>
    %384 = arith.negf %383 : vector<1x32xf32>
    %385 = math.exp %384 : vector<1x32xf32>
    %cst_133 = arith.constant 1.000000e+00 : f32
    %386 = vector.broadcast %cst_133 : f32 to vector<1x32xf32>
    %387 = arith.addf %386, %385 : vector<1x32xf32>
    %388 = arith.divf %386, %387 : vector<1x32xf32>
    %389 = vector.extract_strided_slice %268 {offsets = [3, 0], sizes = [1, 32], strides = [1, 1]} : vector<4x32xf32> to vector<1x32xf32>
    %390 = arith.addf %389, %379 : vector<1x32xf32>
    %391 = arith.negf %390 : vector<1x32xf32>
    %392 = math.exp %391 : vector<1x32xf32>
    %cst_134 = arith.constant 1.000000e+00 : f32
    %393 = vector.broadcast %cst_134 : f32 to vector<1x32xf32>
    %394 = arith.addf %393, %392 : vector<1x32xf32>
    %395 = arith.divf %393, %394 : vector<1x32xf32>
    %396 = vector.extract_strided_slice %274 {offsets = [3, 0], sizes = [1, 32], strides = [1, 1]} : vector<4x32xf32> to vector<1x32xf32>
    %397 = arith.mulf %388, %381 : vector<1x32xf32>
    %398 = arith.addf %396, %397 : vector<1x32xf32>
    %399 = math.tanh %398 : vector<1x32xf32>
    %cst_135 = arith.constant 1.000000e+00 : f32
    %400 = vector.broadcast %cst_135 : f32 to vector<1x32xf32>
    %401 = arith.subf %400, %395 : vector<1x32xf32>
    %402 = arith.mulf %401, %399 : vector<1x32xf32>
    %403 = arith.mulf %395, %374 : vector<1x32xf32>
    %404 = arith.addf %402, %403 : vector<1x32xf32>
    %405 = tpu.concatenate %314, %344, %374, %404 in 0 : vector<1x32xf32>, vector<1x32xf32>, vector<1x32xf32>, vector<1x32xf32> -> vector<4x32xf32>
    %c0_136 = arith.constant 0 : index
    %c0_137 = arith.constant 0 : index
    %c0_138 = arith.constant 0 : index
    %406 = vector.load %arg11[%c0_136, %c0_137, %c0_138] : memref<1x4x32xf32, #tpu.memory_space<vmem>>, vector<1x4x32xf32>
    %407 = vector.shape_cast %406 : vector<1x4x32xf32> to vector<4x32xf32>
    %408 = vector.shape_cast %405 : vector<4x32xf32> to vector<1x4x32xf32>
    tpu.vector_store %arg11[%c0_136, %c0_137, %c0_138], %408 {strides = array<i32>} : memref<1x4x32xf32, #tpu.memory_space<vmem>>, vector<1x4x32xf32>,
    return
  }
  func.func @transform_0(%arg0: i32) -> (i32, i32, i32) {
    %c0_i32 = arith.constant 0 : i32
    %c0_i32_0 = arith.constant 0 : i32
    %c0_i32_1 = arith.constant 0 : i32
    return %arg0, %c0_i32, %c0_i32_0 : i32, i32, i32
  }
  func.func @transform_1(%arg0: i32) -> (i32, i32, i32) {
    %c0_i32 = arith.constant 0 : i32
    %c0_i32_0 = arith.constant 0 : i32
    %c0_i32_1 = arith.constant 0 : i32
    return %arg0, %c0_i32, %c0_i32_0 : i32, i32, i32
  }
  func.func @transform_2(%arg0: i32) -> (i32, i32, i32) {
    %c0_i32 = arith.constant 0 : i32
    %c0_i32_0 = arith.constant 0 : i32
    %c0_i32_1 = arith.constant 0 : i32
    return %arg0, %c0_i32, %c0_i32_0 : i32, i32, i32
  }
  func.func @transform_3(%arg0: i32) -> (i32, i32, i32) {
    %c0_i32 = arith.constant 0 : i32
    %c0_i32_0 = arith.constant 0 : i32
    %c0_i32_1 = arith.constant 0 : i32
    return %arg0, %c0_i32, %c0_i32_0 : i32, i32, i32
  }
  func.func @transform_4(%arg0: i32) -> (i32, i32) {
    %c0_i32 = arith.constant 0 : i32
    %c0_i32_0 = arith.constant 0 : i32
    %c0_i32_1 = arith.constant 0 : i32
    return %c0_i32, %c0_i32_0 : i32, i32
  }
  func.func @transform_5(%arg0: i32) -> (i32, i32, i32) {
    %c0_i32 = arith.constant 0 : i32
    %c0_i32_0 = arith.constant 0 : i32
    %c0_i32_1 = arith.constant 0 : i32
    %c0_i32_2 = arith.constant 0 : i32
    return %c0_i32, %c0_i32_0, %c0_i32_1 : i32, i32, i32
  }
  func.func @transform_6(%arg0: i32) -> (i32, i32, i32) {
    %c0_i32 = arith.constant 0 : i32
    %c0_i32_0 = arith.constant 0 : i32
    %c0_i32_1 = arith.constant 0 : i32
    %c0_i32_2 = arith.constant 0 : i32
    return %c0_i32, %c0_i32_0, %c0_i32_1 : i32, i32, i32
  }
  func.func @transform_7(%arg0: i32) -> (i32, i32) {
    %c0_i32 = arith.constant 0 : i32
    %c0_i32_0 = arith.constant 0 : i32
    %c0_i32_1 = arith.constant 0 : i32
    return %c0_i32, %c0_i32_0 : i32, i32
  }
  func.func @transform_8(%arg0: i32) -> (i32, i32, i32) {
    %c0_i32 = arith.constant 0 : i32
    %c0_i32_0 = arith.constant 0 : i32
    %c0_i32_1 = arith.constant 0 : i32
    return %arg0, %c0_i32, %c0_i32_0 : i32, i32, i32
  }
  func.func @transform_9(%arg0: i32) -> (i32, i32, i32) {
    %c0_i32 = arith.constant 0 : i32
    %c0_i32_0 = arith.constant 0 : i32
    %c0_i32_1 = arith.constant 0 : i32
    return %arg0, %c0_i32, %c0_i32_0 : i32, i32, i32
  }
  func.func @transform_10(%arg0: i32) -> (i32, i32, i32) {
    %c0_i32 = arith.constant 0 : i32
    %c0_i32_0 = arith.constant 0 : i32
    %c0_i32_1 = arith.constant 0 : i32
    return %arg0, %c0_i32, %c0_i32_0 : i32, i32, i32
  }
}

</mosaic_0001>

<bundles_post_ra>
// kernel: _forward_core.1
= control target key start
LH: loop header
LB: loop body
LE: loop exit
PB: predicated region body
PF: predicated region fallthrough
CT: control target
= control target key end

     0   :  { %s5001_s0 = inlined_call_operand.vmem [shape: f32[2,32,32], index: 0, kind: input, shape index: {}]   ;;  %s5002_s1 = inlined_call_operand.vmem [shape: f32[2,4,32], index: 1, kind: input, shape index: {}]   ;;  %s5003_s2 = inlined_call_operand.vmem [shape: f32[2,32,32], index: 2, kind: input, shape index: {}]   ;;  %s5004_s3 = inlined_call_operand.vmem [shape: f32[2,4,32], index: 3, kind: input, shape index: {}]   ;;  %s5005_s4 = inlined_call_operand.vmem [shape: f32[4,4], index: 4, kind: input, shape index: {}]   ;;  %s5006_s5 = inlined_call_operand.vmem [shape: bf16[14,32,32], index: 5, kind: input, shape index: {}]   ;;  %s5007_s6 = inlined_call_operand.vmem [shape: bf16[3,32,96], index: 6, kind: input, shape index: {}]   ;;  %s5008_s7 = inlined_call_operand.vmem [shape: f32[13,32], index: 7, kind: input, shape index: {}]   ;;  %s5009_s8 = inlined_call_operand.hbm [shape: f32[2,4,32], index: 8, kind: output, shape index: {0}]   ;;  %s5010_s9 = inlined_call_operand.hbm [shape: f32[2,4,16], index: 9, kind: output, shape index: {1}]   ;;  %s5011_s10 = inlined_call_operand.vmem [shape: f32[2,4,32], index: 10, kind: output, shape index: {2}]  }
   0x1   :  { %5017 = sst [smem:[#allocation8_spill]] %s5001_s0 }
   0x2   :  { %5018 = sst [smem:[#allocation9_spill]] %s5002_s1 }
   0x3   :  { %5019 = sst [smem:[#allocation10_spill]] %s5003_s2 }
   0x4   :  { %5020 = sst [smem:[#allocation11_spill]] %s5004_s3 }
   0x5   :  { %5021 = sst [smem:[#allocation12_spill]] %s5005_s4 }
   0x6   :  { %16 = vsyncpa [#allocation3], 0 }
   0x7   :  { %18 = vsyncpa [#allocation3 + $0x1], 0 }
   0x8   :  { %19 = vsyncpa [#allocation5], 0 }
   0x9   :  { %21 = vsyncpa [#allocation5 + $0x1], 0  ;;  %s4273_s13 = smov 0   ;;  %s4275_s14 = smov 0  }
   0xa   :  { %s4277_s15 = smov 0   ;;  %s4279_s16 = smov 0  }
   0xb LB: > { %s4294_s17 = sadd.s32 4294967295, %s4207_s16   ;;  %s3317_s18 = sadd.s32 4294967294, %s4207_s16   ;;  %s4207_s16 = sphi %s4279_s16, %s5036_s16   ;;  %s4203_s15 = sphi %s4277_s15, %s5035_s15   ;;  %s4199_s14 = sphi %s4275_s14, %s5034_s14   ;;  %s4195_s13 = sphi %s4273_s13, %s5033_s13  }
   0xc   : > { %s4298_s19 = sadd.s32 1, %s4207_s16   ;;  %s222_s20 = sadd.s32 1, %s4203_s15 }
   0xd   : > { %s219_s21 = ssub.s32 %s4207_s16, %s4298_s19  ;;  %p232_p0 = scmp.ne.s32.totalorder %s4203_s15, %s4199_s14 }
   0xe   : > { %p220_p1 = scmp.eq.s32.totalorder %s219_s21, 0  ;;  %p233_p2 = scmp.eq.s32.totalorder %s4294_s17, 1 }
   0xf   : > { %p238_p3 = scmp.ne.s32.totalorder %s4199_s14, %s4195_s13  ;;  %p239_p4 = scmp.eq.s32.totalorder %s3317_s18, 1 }
  0x10   : > { %s4309_s22 = scalar_select %p220_p1, %s4203_s15, %s222_s20  }
  0x11   : > { %p4311_p5 = por %p233_p2, %p232_p0  ;;  %p4315_p6 = por %p239_p4, %p238_p3 }
  0x12   : > { %p3320_p7 = scmp.ge.s32.totalorder %s4207_s16, 1  ;;  %p351_p8 = scmp.lt.s32.totalorder %s4207_s16, 3 }
  0x14   : > { %p352_p9 = pnand %p3320_p7, %p351_p8 }
  0x15   : > { %v3991_v0 = vld [vmem:[%s5007_s6] sm:$0xff] (!%p352_p9)   ;;  %p411_p10 = scmp.lt.s32.totalorder (!%p352_p9), %s4294_s17, 1  ;;  %v3992_v1 = vld [vmem:[%s5007_s6 + $0x8] sm:$0xff] (!%p352_p9)   ;;  %s5024_s0 = sld [smem:[#allocation8_spill]] (!%p352_p9)  ;;  %vm464_vm0 = vcmask (!%p352_p9), 261120   ;;  %vm533_vm1 = vcmask (!%p352_p9), 130048  }
  0x16   : > { %355 = sbr.rel (%p352_p9) target bundleno = 6955 (0x1b2b), region = 52  ;;  %3616 = vmatprep.subr.bf16.mxu0 (!%p352_p9), %v3991_v0  ;;  %s4209_s20 = smov (!%p352_p9), 96   ;;  %vm4215_vm2 = vmmov (!%p352_p9), 0   ;;  %vm1118_vm3 = vcmask (!%p352_p9), 1040384   ;;  %vm1120_vm4 = vcmask (!%p352_p9), 1041408   ;;  %vm1122_vm5 = vcmask (!%p352_p9), 1042432  }
  0x17   : > { %3617 = vmatpush3.bf16.msra.mxu0 (!%p352_p9), %v3991_v0  ;;  %s5025_s2 = sld [smem:[#allocation10_spill]] (!%p352_p9)  ;;  %s5013_s27 = smov (!%p352_p9), 64   ;;  %vm1307_vm6 = vcmask (!%p352_p9), 257024   ;;  %vm1776_vm7 = vcmask (!%p352_p9), 27648   ;;  %vm1791_vm8 = vcmask (!%p352_p9), 31744   ;;  %vm2249_vm9 = vcmask (!%p352_p9), 125952  }
  0x18   : > { %3618 = vmatprep.subr.bf16.mxu0 (!%p352_p9), %v3992_v1  ;;  %s5014_s28 = smov (!%p352_p9), 80   ;;  %s5012_s11 = smov (!%p352_p9), 48  }
  0x19   : > { %s5026_s3 = sld [smem:[#allocation11_spill]] (!%p352_p9)  ;;  %s5027_s25 = smov (!%p352_p9), 80  }
  0x1a   : > { %s5028_s4 = sld [smem:[#allocation12_spill]] (!%p352_p9)  ;;  %s5030_s12 = smov (!%p352_p9), 48  }
  0x1b   : > { %3619 = vmatpush3.bf16.msra.mxu0 (!%p352_p9), %v3992_v1  ;;  %s5031_s1 = sld [smem:[#allocation9_spill]] (!%p352_p9) }
  0x1d   : > { %s4329_s29 = scalar_select %p411_p10, %s4294_s17, 1 }
  0x1f   : > { %s3489_s30 = sshll.u32 %s4329_s29, 5 }
  0x20   : > { %s415_s18 = scalar_lea.vmem %s5024_s0, %s3489_s30  ;;  %s424_s26 = scalar_lea.vmem %s5025_s2, %s3489_s30 }
  0x21   : > { %v4337_v2 = vld [vmem:[%s415_s18] sm:$0xff]  ;;  %v4339_v3 = vld [vmem:[%s415_s18 + $0x8] sm:$0xff]  ;;  %v4341_v4 = vld [vmem:[%s415_s18 + $0x10] sm:$0xff]  ;;  %s4212_s30 = smov 112   ;;  %s4216_s0 = smov [#allocation2]  }
  0x22   : > { %v450_v5 = vpack.c.bf16 %v4339_v3, %v4337_v2  ;;  %v4345_v6 = vld [vmem:[%s415_s18 + $0x18] sm:$0xff]  ;;  %v4372_v19 = vld [vmem:[%s424_s26 + $0x10] sm:$0xff]  ;;  %v4374_v22 = vld [vmem:[%s424_s26] sm:$0xff] }
  0x23   : > { %v451_v7 = vpack.c.bf16 %v4345_v6, %v4341_v4  ;;  %v4377_v27 = vld [vmem:[%s424_s26 + $0x8] sm:$0xff]  ;;  %v4383_v34 = vld [vmem:[%s424_s26 + $0x18] sm:$0xff] }
  0x24   : > { %3620 = vmatprep.mubr.msk.bf16.mxu0 %vm464_vm0, %v450_v5 }
  0x25   : > { %3621 = vmatmul.mubr.msk.bf16.vlgmr.msra.gmra.mrb[0].mxu0 %vm464_vm0, %v451_v7 }
  0xf8   : > { %v3622_v8 = vpop.f32.mrb[0].mxu0 }
  0xf9   : > { %v505_v9 = vpop.f32.mrb[1].mxu0 }
  0xfa   : > { %v3623_v10 = vpop.f32.mrb[2].mxu0 }
  0xfb   : > { %v4351_v11 = vpack.c.bf16 %v3623_v10, %v3622_v8  ;;  %v508_v12 = vpop.f32.mrb[3].mxu0 }
  0xfc   : > { %v4353_v13 = vpack.c.bf16 %v508_v12, %v505_v9 }
  0xfe   : > { %529 = vrot.lane.b32.xlu0 %v4353_v13, %s4209_s20  ;;  %3628 = vmatprep.mubr.msk.bf16.mxu1 %vm533_vm1, %v4353_v13 }
 0x102   : > { %531 = vrot.lane.b32.xlu0 %v4351_v11, %s4209_s20 }
 0x170   : > { %v530_v14 = vpop.permute.xlu0 %529 }
 0x171   : > { %3936 = vmatprep.subr.msk.bf16.mxu1 %vm533_vm1, %v530_v14  ;;  %v541_v15 = vsel %vm533_vm1, %v530_v14, 0 }
 0x172   : > { %3625 = vmatpush3.bf16.xpose.msra.mxu1 %v541_v15 }
 0x174   : > { %v532_v16 = vpop.permute.xlu0 %531 }
 0x175   : > { %3937 = vmatprep.subr.msk.bf16.mxu1 %vm533_vm1, %v532_v16  ;;  %v544_v17 = vsel %vm533_vm1, %v532_v16, 0 }
 0x17a   : > { %3627 = vmatpush3.bf16.xpose.msra.mxu1 %v544_v17 }
 0x181   : > { %3629 = vmatmul.mubr.msk.bf16.vlgmr.msra.gmra.mrb[0].mxu1 %vm533_vm1, %v4351_v11 }
 0x254   : > { %v3630_v18 = vpop.f32.mrb[0].mxu1 }
 0x255   : > { %v597_v20 = vmul.f32 0.25, %v3630_v18  ;;  %v580_v21 = vpop.f32.mrb[1].mxu1 }
 0x256   : > { %v595_v23 = vmul.f32 0.25, %v580_v21  ;;  %v3631_v24 = vpop.f32.mrb[2].mxu1 }
 0x257   : > { %v583_v25 = vpop.f32.mrb[3].mxu1  ;;  %v601_v26 = vadd.f32 %v597_v20, %v4372_v19  ;;  %v598_v31 = vmul.f32 0.25, %v3631_v24 }
 0x258   : > { %v596_v28 = vmul.f32 0.25, %v583_v25  ;;  %v599_v29 = vadd.f32 %v595_v23, %v4374_v22 }
 0x259   : > { %v609_v30 = vsel %vm464_vm0, %v601_v26, -inf  ;;  %v602_v36 = vadd.f32 %v598_v31, %v4383_v34 }
 0x25a   : > { %610 = vmax.xlane.f32.xlu0 %v609_v30  ;;  %v603_v32 = vsel %vm464_vm0, %v599_v29, -inf  ;;  %v600_v33 = vadd.f32 %v596_v28, %v4377_v27 }
 0x25b   : > { %604 = vmax.xlane.f32.xlu1 %v603_v32  ;;  %v612_v37 = vsel %vm464_vm0, %v602_v36, -inf }
 0x25c   : > { %v606_v35 = vsel %vm464_vm0, %v600_v33, -inf }
 0x25f   : > { %607 = vmax.xlane.f32.xlu1 %v606_v35 }
 0x263   : > { %613 = vmax.xlane.f32.xlu1 %v612_v37 }
 0x270   : > { %651 = vrot.lane.b32.xlu0 %v4351_v11, %s5013_s27 }
 0x274   : > { %649 = vrot.lane.b32.xlu1 %v4353_v13, %s5013_s27 }
 0x2e7   : > { %v611_v38 = vpop.xlane.xlu0 %610 }
 0x2e8   : > { %v617_v39 = vsub.f32 %v601_v26, %v611_v38  ;;  %v605_v40 = vpop.xlane.xlu1 %604 }
 0x2e9   : > { %v615_v41 = vsub.f32 %v599_v29, %v605_v40 }
 0x2ea   : > { %v623_v42 = vmul.f32 1.442695, %v617_v39 }
 0x2eb   : > { %v619_v43 = vmul.f32 1.442695, %v615_v41  ;;  %v652_v52 = vpop.permute.xlu0 %651 }
 0x2ec   : > { %4025 = vpow2.f32 %v623_v42  ;;  %v608_v44 = vpop.xlane.xlu1 %607 }
 0x2ed   : > { %4027 = vpow2.f32 %v619_v43  ;;  %v616_v45 = vsub.f32 %v600_v33, %v608_v44 }
 0x2ef   : > { %v621_v48 = vmul.f32 1.442695, %v616_v45 }
 0x2f0   : > { %v614_v46 = vpop.xlane.xlu1 %613 }
 0x2f1   : > { %v618_v47 = vsub.f32 %v602_v36, %v614_v46 }
 0x2f3   : > { %v625_v49 = vmul.f32 1.442695, %v618_v47 }
 0x2f4   : > { %v650_v50 = vpop.permute.xlu1 %649 }
 0x2f5   : > { %4029 = vpow2.f32 %v625_v49  ;;  %3632 = vmatprep.subr.bf16.mxu0 %v650_v50 }
 0x2f6   : > { %v4026_v51 = vpop.eup %4025  ;;  %3633 = vmatpush3.bf16.msra.mxu0 %v650_v50  ;;  %4031 = vpow2.f32 %v621_v48 }
 0x2f7   : > { %3634 = vmatprep.subr.bf16.mxu0 %v652_v52  ;;  %v633_v53 = vsel %vm464_vm0, %v4026_v51, 0.0  ;;  %v4028_v54 = vpop.eup %4027 }
 0x2f8   : > { %634 = vadd.xlane.f32.xlu1 %v633_v53  ;;  %v627_v55 = vsel %vm464_vm0, %v4028_v54, 0.0 }
 0x2fa   : > { %3635 = vmatpush3.bf16.msra.mxu0 %v652_v52 }
 0x2fc   : > { %628 = vadd.xlane.f32.xlu1 %v627_v55 }
 0x2ff   : > { %v4030_v56 = vpop.eup %4029 }
 0x300   : > { %v636_v57 = vsel %vm464_vm0, %v4030_v56, 0.0  ;;  %v4032_v58 = vpop.eup %4031 }
 0x301   : > { %637 = vadd.xlane.f32.xlu1 %v636_v57  ;;  %v630_v59 = vsel %vm464_vm0, %v4032_v58, 0.0 }
 0x305   : > { %631 = vadd.xlane.f32.xlu1 %v630_v59 }
 0x316   : > { %716 = vrot.lane.b32.xlu1 %v4353_v13, %s5014_s28 }
 0x31a   : > { %718 = vrot.lane.b32.xlu1 %v4351_v11, %s5014_s28 }
 0x31e   : > { %712 = vrot.lane.b32.xlu1 %v4353_v13, %s4212_s30 }
 0x322   : > { %714 = vrot.lane.b32.xlu1 %v4351_v11, %s4212_s30 }
 0x385   : > { %v635_v60 = vpop.xlane.xlu1 %634 }
 0x389   : > { %v629_v61 = vpop.xlane.xlu1 %628 }
 0x38e   : > { %v638_v62 = vpop.xlane.xlu1 %637 }
 0x38f   : > { %4033 = vrcp.f32 %v638_v62 }
 0x390   : > { %4035 = vrcp.f32 %v629_v61 }
 0x391   : > { %4037 = vrcp.f32 %v635_v60 }
 0x392   : > { %v632_v63 = vpop.xlane.xlu1 %631 }
 0x393   : > { %4039 = vrcp.f32 %v632_v63 }
 0x396   : > { %v717_v0 = vpop.permute.xlu1 %716 }
 0x397   : > { %3938 = vmatprep.subr.msk.bf16.mxu0 %vm533_vm1, %v717_v0  ;;  %v727_v18 = vsel %vm533_vm1, %v717_v0, 0 }
 0x399   : > { %v4034_v1 = vpop.eup %4033 }
 0x39a   : > { %v4036_v5 = vpop.eup %4035  ;;  %v646_v9 = vmul.f32 %v4034_v1, %v4030_v56  ;;  %v719_v10 = vpop.permute.xlu1 %718 }
 0x39b   : > { %v4038_v7 = vpop.eup %4037  ;;  %v643_v12 = vmul.f32 %v4036_v5, %v4028_v54  ;;  %v730_v21 = vsel %vm533_vm1, %v719_v10, 0 }
 0x39c   : > { %v645_v15 = vmul.f32 %v4038_v7, %v4026_v51 }
 0x39d   : > { %v4040_v8 = vpop.eup %4039 }
 0x39e   : > { %v644_v14 = vmul.f32 %v4040_v8, %v4032_v58  ;;  %v648_v17 = vpack.c.bf16 %v646_v9, %v645_v15  ;;  %v713_v20 = vpop.permute.xlu1 %712  ;;  %v3993_v9 = vld [vmem:[%s5006_s5 + $0x38] sm:$0xff]  }
 0x3a0   : > { %v647_v16 = vpack.c.bf16 %v644_v14, %v643_v12 }
 0x3a2   : > { %3636 = vmatprep.mubr.msk.bf16.mxu0 %vm464_vm0, %v647_v16  ;;  %v715_v23 = vpop.permute.xlu1 %714 }
 0x3a3   : > { %3637 = vmatmul.mubr.msk.bf16.vlgmr.msra.gmra.mrb[4].mxu0 %vm464_vm0, %v648_v17 }
 0x3a4   : > { %3641 = vmatpush3.bf16.xpose.msra.mxu0 %v727_v18  ;;  %3644 = vmatprep.mubr.msk.bf16.mxu0 %vm533_vm1, %v713_v20 }
 0x3a5   : > { %3939 = vmatprep.subr.msk.bf16.mxu0 %vm533_vm1, %v719_v10 }
 0x3ac   : > { %3643 = vmatpush3.bf16.xpose.msra.mxu0 %v730_v21 }
 0x3b3   : > { %3645 = vmatmul.mubr.msk.bf16.vlgmr.msra.gmra.mrb[8].mxu0 %vm533_vm1, %v715_v23  ;;  %v3994_v23 = vld [vmem:[%s5006_s5 + $0x30] sm:$0xff]  }
 0x476   : > { %v4412_v24 = vpop.f32.mrb[4].mxu0 }
 0x477   : > { %v4414_v25 = vpop.f32.mrb[5].mxu0 }
 0x478   : > { %v4416_v26 = vpop.f32.mrb[6].mxu0 }
 0x479   : > { %v711_v28 = vpack.c.bf16 %v4416_v26, %v4412_v24  ;;  %v4420_v29 = vpop.f32.mrb[7].mxu0  ;;  %v3998_v24 = vld [vmem:[%s5007_s6 + $0x18] sm:$0xff]  }
 0x47a   : > { %v710_v30 = vpack.c.bf16 %v4420_v29, %v4414_v25  ;;  %v3997_v25 = vld [vmem:[%s5007_s6 + $0x10] sm:$0xff]  }
 0x486   : > { %v3646_v31 = vpop.f32.mrb[8].mxu0 }
 0x487   : > { %v766_v32 = vpop.f32.mrb[9].mxu0  ;;  %v783_v33 = vmul.f32 0.25, %v3646_v31 }
 0x488   : > { %v781_v35 = vmul.f32 0.25, %v766_v32  ;;  %v3647_v36 = vpop.f32.mrb[10].mxu0 }
 0x489   : > { %v769_v37 = vpop.f32.mrb[11].mxu0  ;;  %v784_v40 = vmul.f32 0.25, %v3647_v36  ;;  %v787_v43 = vadd.f32 %v783_v33, %v4372_v19 }
 0x48a   : > { %v782_v38 = vmul.f32 0.25, %v769_v37  ;;  %v785_v39 = vadd.f32 %v781_v35, %v4374_v22 }
 0x48b   : > { %v795_v45 = vsel %vm464_vm0, %v787_v43, -inf  ;;  %v788_v46 = vadd.f32 %v784_v40, %v4383_v34 }
 0x48c   : > { %v789_v41 = vsel %vm464_vm0, %v785_v39, -inf  ;;  %v786_v42 = vadd.f32 %v782_v38, %v4377_v27  ;;  %v3995_v38 = vld [vmem:[%s5006_s5] sm:$0xff]  }
 0x48d   : > { %790 = vmax.xlane.f32.xlu0 %v789_v41  ;;  %v798_v47 = vsel %vm464_vm0, %v788_v46, -inf  ;;  %3668 = vmatprep.subr.bf16.mxu0 %v3995_v38 }
 0x48e   : > { %v792_v44 = vsel %vm464_vm0, %v786_v42, -inf  ;;  %3669 = vmatpush3.bf16.msra.mxu0 %v3995_v38 }
 0x48f   : > { %793 = vmax.xlane.f32.xlu1 %v792_v44 }
 0x491   : > { %796 = vmax.xlane.f32.xlu0 %v795_v45 }
 0x495   : > { %799 = vmax.xlane.f32.xlu0 %v798_v47 }
 0x51a   : > { %v791_v22 = vpop.xlane.xlu0 %790 }
 0x51b   : > { %v801_v48 = vsub.f32 %v785_v39, %v791_v22  ;;  %v3996_v39 = vld [vmem:[%s5006_s5 + $0x8] sm:$0xff]  }
 0x51c   : > { %v794_v49 = vpop.xlane.xlu1 %793  ;;  %3670 = vmatprep.subr.bf16.mxu0 %v3996_v39 }
 0x51d   : > { %v805_v27 = vmul.f32 1.442695, %v801_v48  ;;  %v802_v52 = vsub.f32 %v786_v42, %v794_v49  ;;  %3671 = vmatpush3.bf16.msra.mxu0 %v3996_v39 }
 0x51e   : > { %v797_v50 = vpop.xlane.xlu0 %796 }
 0x51f   : > { %v803_v51 = vsub.f32 %v787_v43, %v797_v50  ;;  %v807_v55 = vmul.f32 1.442695, %v802_v52  ;;  %v1030_v52 = vlaneseq }
 0x521   : > { %v809_v19 = vmul.f32 1.442695, %v803_v51 }
 0x522   : > { %v800_v53 = vpop.xlane.xlu0 %799 }
 0x523   : > { %4041 = vpow2.f32 %v809_v19  ;;  %v804_v54 = vsub.f32 %v788_v46, %v800_v53  ;;  %v4503_v19 = vshrl.u32 %v1030_v52, 7 }
 0x524   : > { %4043 = vpow2.f32 %v805_v27 }
 0x525   : > { %v811_v56 = vmul.f32 1.442695, %v804_v54  ;;  %v1032_v53 = vsub.s32 0, %v4503_v19 }
 0x527   : > { %4045 = vpow2.f32 %v811_v56 }
 0x528   : > { %4047 = vpow2.f32 %v807_v55 }
 0x52d   : > { %v4042_v34 = vpop.eup %4041 }
 0x52e   : > { %v819_v57 = vsel %vm464_vm0, %v4042_v34, 0.0  ;;  %v4044_v58 = vpop.eup %4043 }
 0x52f   : > { %820 = vadd.xlane.f32.xlu1 %v819_v57  ;;  %v813_v61 = vsel %vm464_vm0, %v4044_v58, 0.0 }
 0x531   : > { %v4046_v59 = vpop.eup %4045 }
 0x532   : > { %v822_v60 = vsel %vm464_vm0, %v4046_v59, 0.0  ;;  %v4048_v62 = vpop.eup %4047 }
 0x533   : > { %823 = vadd.xlane.f32.xlu0 %v822_v60  ;;  %814 = vadd.xlane.f32.xlu1 %v813_v61  ;;  %v816_v63 = vsel %vm464_vm0, %v4048_v62, 0.0 }
 0x537   : > { %817 = vadd.xlane.f32.xlu0 %v816_v63 }
 0x544   : > { %835 = vrot.lane.b32.xlu1 %v4353_v13, %s5012_s11 }
 0x548   : > { %1187 = vrot.lane.b32.xlu1 %v3997_v25, %s4209_s20 }
 0x54c   : > { %1189 = vrot.lane.b32.xlu1 %v3998_v24, %s4209_s20 }
 0x54d   : > { %837 = vrot.lane.b32.xlu0 %v4351_v11, %s5012_s11  ;;  %s4529_s11 = sshll.u32 %s4329_s29, 2 }
 0x54e   : > { %s428_s18 = scalar_lea.vmem %s5026_s3, %s4529_s11  ;;  %s419_s27 = scalar_lea.vmem %s5031_s1, %s4529_s11 }
 0x54f   : > { %s4117_s1 = sshll.u32 %s4216_s0, 4  ;;  %s4118_s1 = int_to_ptr.vmem [resolvable:$false] %s4117_s1 }
 0x550   : > { %s4119_s2 = scalar_lea.vmem %s4118_s1, 128 }
 0x5bc   : > { %v821_v0 = vpop.xlane.xlu1 %820 }
 0x5c0   : > { %v824_v1 = vpop.xlane.xlu0 %823  ;;  %v815_v5 = vpop.xlane.xlu1 %814 }
 0x5c1   : > { %4049 = vrcp.f32 %v824_v1 }
 0x5c2   : > { %4051 = vrcp.f32 %v815_v5 }
 0x5c3   : > { %4053 = vrcp.f32 %v821_v0 }
 0x5c4   : > { %v818_v7 = vpop.xlane.xlu0 %817  ;;  %v836_v8 = vpop.permute.xlu1 %835 }
 0x5c5   : > { %4055 = vrcp.f32 %v818_v7  ;;  %3648 = vmatprep.subr.bf16.mxu1 %v836_v8 }
 0x5c6   : > { %3649 = vmatpush3.bf16.msra.mxu1 %v836_v8 }
 0x5c8   : > { %v838_v10 = vpop.permute.xlu0 %837  ;;  %v1188_v46 = vpop.permute.xlu1 %1187 }
 0x5c9   : > { %3650 = vmatprep.subr.bf16.mxu1 %v838_v10 }
 0x5ca   : > { %3651 = vmatpush3.bf16.msra.mxu1 %v838_v10 }
 0x5cb   : > { %3656 = vmatprep.subr.bf16.mxu1 %v3993_v9  ;;  %v4050_v11 = vpop.eup %4049 }
 0x5cc   : > { %v4052_v13 = vpop.eup %4051  ;;  %v832_v15 = vmul.f32 %v4050_v11, %v4046_v59  ;;  %v1190_v47 = vpop.permute.xlu1 %1189 }
 0x5cd   : > { %v4054_v12 = vpop.eup %4053  ;;  %v829_v16 = vmul.f32 %v4052_v13, %v4044_v58 }
 0x5ce   : > { %v831_v18 = vmul.f32 %v4054_v12, %v4042_v34 }
 0x5cf   : > { %v4056_v14 = vpop.eup %4055 }
 0x5d0   : > { %v830_v17 = vmul.f32 %v4056_v14, %v4048_v62  ;;  %v834_v21 = vpack.c.bf16 %v832_v15, %v831_v18 }
 0x5d2   : > { %v833_v20 = vpack.c.bf16 %v830_v17, %v829_v16 }
 0x5d4   : > { %3652 = vmatprep.mubr.msk.bf16.mxu1 %vm464_vm0, %v833_v20 }
 0x5d5   : > { %3653 = vmatmul.mubr.msk.bf16.vlgmr.msra.gmra.mrb[4].mxu1 %vm464_vm0, %v834_v21 }
 0x5d6   : > { %3657 = vmatpush3.bf16.msra.mxu1 %v3993_v9 }
 0x5d7   : > { %3662 = vmatprep.subr.bf16.mxu1 %v3994_v23 }
 0x6a8   : > { %v3654_v31 = vpop.f32.mrb[4].mxu1 }
 0x6a9   : > { %v881_v32 = vpop.f32.mrb[5].mxu1 }
 0x6aa   : > { %v3655_v33 = vpop.f32.mrb[6].mxu1 }
 0x6ab   : > { %v897_v35 = vpack.c.bf16 %v3655_v33, %v3654_v31  ;;  %v884_v36 = vpop.f32.mrb[7].mxu1 }
 0x6ac   : > { %v896_v37 = vpack.c.bf16 %v884_v36, %v881_v32  ;;  %v444_v36 = vld [vmem:[%s428_s18] sm:$0xf]  ;;  %s4697_s18 = sand.u32 1, %s4199_s14  }
 0x6ad   : > { %s3321_s28 = sshll.u32 %s4697_s18, 2 }
 0x6ae   : > { %3658 = vmatprep.mubr.msk.bf16.mxu1 %vm533_vm1, %v896_v37 }
 0x6af   : > { %3659 = vmatmul.mubr.msk.bf16.vlgmr.msra.gmra.mrb[8].mxu1 %vm533_vm1, %v897_v35 }
 0x6b0   : > { %3663 = vmatpush3.bf16.msra.mxu1 %v3994_v23  ;;  %3664 = vmatprep.mubr.msk.bf16.mxu1 %vm533_vm1, %v710_v30 }
 0x6b1   : > { %3684 = vmatprep.subr.bf16.mxu1 %v1188_v46 }
 0x6bb   : > { %3665 = vmatmul.mubr.msk.bf16.vlgmr.msra.gmra.mrb[8].mxu1 %vm533_vm1, %v711_v28 }
 0x6bc   : > { %3685 = vmatpush3.bf16.msra.mxu1 %v1188_v46 }
 0x6bd   : > { %3686 = vmatprep.subr.bf16.mxu1 %v1190_v47 }
 0x6c0   : > { %3687 = vmatpush3.bf16.msra.mxu1 %v1190_v47 }
 0x78e   : > { %v3666_v26 = vpop.f32.mrb[8].mxu1 }
 0x78f   : > { %v1005_v28 = vpop.f32.mrb[9].mxu1  ;;  %v1022_v43 = vadd.f32 %v3666_v26, %v4341_v4 }
 0x790   : > { %v3667_v29 = vpop.f32.mrb[10].mxu1  ;;  %v1020_v41 = vadd.f32 %v1005_v28, %v4337_v2  ;;  %v4481_v2 = vld [vmem:[%s5008_s7] sm:$0xff] }
 0x791   : > { %v1023_v30 = vadd.f32 %v3667_v29, %v4345_v6  ;;  %v1008_v40 = vpop.f32.mrb[11].mxu1  ;;  %v1112_v4 = vrot.slane %v4481_v2, 4  ;;  %v4214_v6 = vmov 0.0   ;;  %v1114_v22 = vrot.slane %v4481_v2, 3 }
 0x792   : > { %v1021_v42 = vadd.f32 %v1008_v40, %v4339_v3  ;;  %v1110_v3 = vrot.slane %v4481_v2, 5  ;;  %3676 = vmatprep.subr.bf16.mxu0 %v4214_v6  ;;  %v1116_v48 = vrot.slane %v4481_v2, 2  ;;  %3700 = vmatprep.subr.bf16.mxu1 %v4214_v6  ;;  %v1033_v54 = vrot.slane %v4481_v2, %v1032_v53 }
 0x793   : > { %v1029_v45 = vpack.c.bf16 %v1023_v30, %v1022_v43 }
 0x794   : > { %v1028_v44 = vpack.c.bf16 %v1021_v42, %v1020_v41  ;;  %v1119_v49 = vsel %vm1118_vm3, %v1110_v3, %v1112_v4 }
 0x795   : > { %v1121_v50 = vsel %vm1120_vm4, %v1119_v49, %v1114_v22 }
 0x796   : > { %3672 = vmatprep.mubr.msk.bf16.mxu0 %vm464_vm0, %v1028_v44  ;;  %v4495_v51 = vsel %vm1122_vm5, %v1121_v50, %v1116_v48  ;;  %v3999_v50 = vld [vmem:[%s5006_s5 + $0x40] sm:$0xff]  }
 0x797   : > { %3673 = vmatmul.mubr.msk.bf16.vlgmr.msra.gmra.mrb[12].mxu0 %vm464_vm0, %v1029_v45  ;;  %v1129_v27 = vpack.c.bf16 %v4495_v51, %v4495_v51 }
 0x798   : > { %3680 = vmatprep.mubr.msk.bf16.mxu0 %vm4215_vm2, %v4214_v6  ;;  %3677 = vmatpush3.bf16.msra.mxu0 %v3997_v25 }
 0x799   : > { %3678 = vmatprep.subr.bf16.mxu0 %v4214_v6 }
 0x79c   : > { %3679 = vmatpush3.bf16.msra.mxu0 %v3998_v24 }
 0x79d   : > { %3692 = vmatprep.subr.bf16.mxu0 %v4214_v6 }
 0x79f   : > { %3681 = vmatmul.mubr.msk.bf16.vlgmr.msra.gmra.mrb[16].mxu0 %vm464_vm0, %v1129_v27 }
 0x7a0   : > { %3696 = vmatprep.mubr.msk.bf16.mxu0 %vm4215_vm2, %v4214_v6 }
 0x86a   : > { %v3674_v55 = vpop.f32.mrb[12].mxu0 }
 0x86b   : > { %v1095_v56 = vadd.f32 %v3674_v55, %v1033_v54  ;;  %v1086_v34 = vpop.f32.mrb[13].mxu0 }
 0x86c   : > { %v1087_v57 = vadd.f32 %v1086_v34, %v1033_v54  ;;  %v3675_v58 = vpop.f32.mrb[14].mxu0 }
 0x86d   : > { %v1103_v59 = vmax.f32 %v1095_v56, 0.0  ;;  %v1098_v60 = vadd.f32 %v3675_v58, %v1033_v54  ;;  %v1089_v61 = vpop.f32.mrb[15].mxu0 }
 0x86e   : > { %v1101_v62 = vmax.f32 %v1087_v57, 0.0  ;;  %v1090_v63 = vadd.f32 %v1089_v61, %v1033_v54 }
 0x86f   : > { %v1104_v0 = vmax.f32 %v1098_v60, 0.0  ;;  %v1107_v5 = vadd.f32 %v1103_v59, %v1022_v43 }
 0x870   : > { %v1102_v1 = vmax.f32 %v1090_v63, 0.0  ;;  %v1105_v8 = vadd.f32 %v1101_v62, %v1020_v41 }
 0x871   : > { %v1108_v7 = vadd.f32 %v1104_v0, %v1023_v30 }
 0x872   : > { %v1106_v9 = vadd.f32 %v1102_v1, %v1021_v42  ;;  %v1179_v13 = vpop.f32.mrb[16].mxu0 }
 0x873   : > { %v1186_v10 = vpack.c.bf16 %v1108_v7, %v1107_v5  ;;  %v3682_v12 = vpop.f32.mrb[17].mxu0  ;;  %v1253_v33 = vpack.c.bf16 %v1179_v13, %v1179_v13 }
 0x874   : > { %v1185_v11 = vpack.c.bf16 %v1106_v9, %v1105_v8  ;;  %v1182_v14 = vpop.f32.mrb[18].mxu0 }
 0x875   : > { %v3683_v15 = vpop.f32.mrb[19].mxu0 }
 0x876   : > { %3688 = vmatprep.mubr.msk.bf16.mxu1 %vm464_vm0, %v1185_v11 }
 0x877   : > { %3689 = vmatmul.mubr.msk.bf16.vlgmr.msra.gmra.mrb[12].mxu1 %vm464_vm0, %v1186_v10 }
 0x878   : > { %3704 = vmatprep.mubr.msk.bf16.mxu1 %vm4215_vm2, %v4214_v6 }
 0x94a   : > { %v3690_v16 = vpop.f32.mrb[12].mxu1 }
 0x94b   : > { %v1233_v17 = vpop.f32.mrb[13].mxu1 }
 0x94c   : > { %v3691_v18 = vpop.f32.mrb[14].mxu1 }
 0x94d   : > { %v4513_v20 = vpack.c.bf16 %v3691_v18, %v3690_v16  ;;  %v1236_v21 = vpop.f32.mrb[15].mxu1 }
 0x94e   : > { %v4515_v23 = vpack.c.bf16 %v1236_v21, %v1233_v17  ;;  %v4000_v17 = vld [vmem:[%s5006_s5 + $0x48] sm:$0xff]  }
 0x94f   : > { %1324 = vrot.lane.b32.xlu1 %v4513_v20, %s4209_s20  ;;  %v1263_v32 = vsel %vm533_vm1, %v4513_v20, 0 }
 0x950   : > { %v1260_v31 = vsel %vm533_vm1, %v4515_v23, 0 }
 0x951   : > { %3693 = vmatpush3.bf16.xpose.msra.mxu0 %v1260_v31 }
 0x952   : > { %3694 = vmatprep.subr.bf16.mxu0 %v4214_v6 }
 0x959   : > { %3695 = vmatpush3.bf16.xpose.msra.mxu0 %v1263_v32 }
 0x95a   : > { %3716 = vmatprep.subr.bf16.mxu0 %v4214_v6 }
 0x960   : > { %3697 = vmatmul.mubr.msk.bf16.vlgmr.msra.gmra.mrb[20].mxu0 %vm533_vm1, %v1253_v33 }
 0x961   : > { %3720 = vmatprep.mubr.msk.bf16.mxu0 %vm4215_vm2, %v4214_v6 }
 0x9c1   : > { %v1325_v41 = vpop.permute.xlu1 %1324 }
 0xa33   : > { %v1299_v35 = vpop.f32.mrb[20].mxu0 }
 0xa34   : > { %v1305_v37 = vmul.f32 0.25, %v1299_v35  ;;  %v3698_v38 = vpop.f32.mrb[21].mxu0  ;;  %v4002_v35 = vld [vmem:[%s5006_s5 + $0x18] sm:$0xff]  }
 0xa35   : > { %v1302_v39 = vpop.f32.mrb[22].mxu0 }
 0xa36   : > { %v3699_v25 = vpop.f32.mrb[23].mxu0  ;;  %v1306_v24 = vadd.f32 %v1305_v37, %v444_v36 }
 0xa38   : > { %v1308_v26 = vsel %vm1307_vm6, %v1306_v24, -inf }
 0xa39   : > { %1309 = vmax.xlane.f32.xlu0 %v1308_v26 }
 0xa4f   : > { %1322 = vrot.lane.b32.xlu0 %v4515_v23, %s4209_s20 }
 0xa53   : > { %1375 = vrot.lane.b32.xlu0 %v4515_v23, %s4212_s30 }
 0xa57   : > { %1373 = vrot.lane.b32.xlu0 %v1253_v33, %s4212_s30  ;;  %v4001_v33 = vld [vmem:[%s5006_s5 + $0x10] sm:$0xff]  }
 0xac6   : > { %v1310_v28 = vpop.xlane.xlu0 %1309 }
 0xac7   : > { %v1311_v29 = vsub.f32 %v1306_v24, %v1310_v28  ;;  %v4003_v28 = vld [vmem:[%s5007_s6 + $0x20] sm:$0xff]  }
 0xac9   : > { %v1312_v30 = vmul.f32 1.442695, %v1311_v29  ;;  %v4004_v29 = vld [vmem:[%s5007_s6 + $0x28] sm:$0xff]  }
 0xaca   : > { %v1323_v40 = vpop.permute.xlu0 %1322 }
 0xacb   : > { %4057 = vpow2.f32 %v1312_v30  ;;  %3701 = vmatpush3.bf16.msra.mxu1 %v1323_v40 }
 0xacc   : > { %3702 = vmatprep.subr.bf16.mxu1 %v4214_v6 }
 0xace   : > { %v1376_v47 = vpop.permute.xlu0 %1375 }
 0xacf   : > { %3703 = vmatpush3.bf16.msra.mxu1 %v1325_v41  ;;  %v1383_v4 = vsel %vm533_vm1, %v1376_v47, 0 }
 0xad0   : > { %3708 = vmatprep.subr.bf16.mxu1 %v4214_v6 }
 0xad2   : > { %v1374_v49 = vpop.permute.xlu0 %1373 }
 0xad5   : > { %v4058_v42 = vpop.eup %4057 }
 0xad6   : > { %v1314_v43 = vsel %vm1307_vm6, %v4058_v42, 0.0 }
 0xad7   : > { %1315 = vadd.xlane.f32.xlu1 %v1314_v43 }
 0xae8   : > { %1377 = vrot.lane.b32.xlu1 %v4513_v20, %s4212_s30 }
 0xb64   : > { %v1316_v44 = vpop.xlane.xlu1 %1315 }
 0xb65   : > { %4059 = vrcp.f32 %v1316_v44 }
 0xb68   : > { %v1378_v22 = vpop.permute.xlu1 %1377 }
 0xb69   : > { %v1386_v48 = vsel %vm533_vm1, %v1378_v22, 0 }
 0xb6f   : > { %v4060_v45 = vpop.eup %4059 }
 0xb70   : > { %v1318_v46 = vmul.f32 %v4060_v45, %v4058_v42 }
 0xb72   : > { %v1319_v3 = vpack.c.bf16 %v1318_v46, %v1318_v46 }
 0xb74   : > { %3705 = vmatmul.mubr.msk.bf16.vlgmr.msra.gmra.mrb[16].mxu1 %vm464_vm0, %v1319_v3 }
 0xb75   : > { %3709 = vmatpush3.bf16.xpose.msra.mxu1 %v1383_v4  ;;  %3712 = vmatprep.mubr.msk.bf16.mxu1 %vm4215_vm2, %v4214_v6 }
 0xb76   : > { %3710 = vmatprep.subr.bf16.mxu1 %v4214_v6 }
 0xb7d   : > { %3711 = vmatpush3.bf16.xpose.msra.mxu1 %v1386_v48 }
 0xb7e   : > { %3730 = vmatprep.subr.bf16.mxu1 %v4214_v6 }
 0xb84   : > { %3713 = vmatmul.mubr.msk.bf16.vlgmr.msra.gmra.mrb[20].mxu1 %vm533_vm1, %v1374_v49 }
 0xb85   : > { %3732 = vmatprep.mubr.msk.bf16.mxu1 %vm4215_vm2, %v4214_v6  ;;  %3731 = vmatpush3.bf16.msra.mxu1 %v3999_v50 }
 0xb86   : > { %3744 = vmatprep.subr.bf16.mxu1 %v4214_v6 }
 0xc47   : > { %v1365_v27 = vpop.f32.mrb[16].mxu1 }
 0xc48   : > { %v1371_v52 = vpack.c.bf16 %v1365_v27, %v1365_v27  ;;  %v3706_v54 = vpop.f32.mrb[17].mxu1 }
 0xc49   : > { %v1368_v55 = vpop.f32.mrb[18].mxu1 }
 0xc4a   : > { %v3707_v56 = vpop.f32.mrb[19].mxu1  ;;  %3733 = vmatmul.mubr.msk.bf16.vlgmr.msra.gmra.mrb[24].mxu1 %vm533_vm1, %v1371_v52 }
 0xc4b   : > { %3748 = vmatprep.mubr.msk.bf16.mxu1 %vm4215_vm2, %v4214_v6  ;;  %3745 = vmatpush3.bf16.msra.mxu1 %v4003_v28  ;;  %v4006_v28 = vld [vmem:[%s5006_s5 + $0x58] sm:$0xff]  }
 0xc4c   : > { %3746 = vmatprep.subr.bf16.mxu1 %v4214_v6 }
 0xc4f   : > { %3747 = vmatpush3.bf16.msra.mxu1 %v4004_v29 }
 0xc50   : > { %3758 = vmatprep.subr.bf16.mxu1 %v4214_v6 }
 0xc57   : > { %v1422_v34 = vpop.f32.mrb[20].mxu1 }
 0xc58   : > { %v1428_v57 = vmul.f32 0.25, %v1422_v34  ;;  %v3714_v58 = vpop.f32.mrb[21].mxu1  ;;  %v445_v34 = vld [vmem:[%s5028_s4] sm:$0xf] }
 0xc59   : > { %v1425_v59 = vpop.f32.mrb[22].mxu1 }
 0xc5a   : > { %v3715_v60 = vpop.f32.mrb[23].mxu1  ;;  %v1429_v61 = vadd.f32 %v1428_v57, %v444_v36 }
 0xc5c   : > { %v1430_v62 = vsel %vm1307_vm6, %v1429_v61, -inf }
 0xc5d   : > { %1431 = vmax.xlane.f32.xlu1 %v1430_v62 }
 0xc6e   : > { %1444 = vrot.lane.b32.xlu1 %v4513_v20, %s5027_s25 }
 0xcea   : > { %v1432_v63 = vpop.xlane.xlu1 %1431 }
 0xceb   : > { %v1433_v0 = vsub.f32 %v1429_v61, %v1432_v63 }
 0xced   : > { %v1434_v1 = vmul.f32 1.442695, %v1433_v0 }
 0xcee   : > { %v1445_v14 = vpop.permute.xlu1 %1444 }
 0xcef   : > { %4061 = vpow2.f32 %v1434_v1 }
 0xcf9   : > { %v4062_v5 = vpop.eup %4061 }
 0xcfa   : > { %v1436_v7 = vsel %vm1307_vm6, %v4062_v5, 0.0 }
 0xcfb   : > { %1437 = vadd.xlane.f32.xlu0 %v1436_v7 }
 0xd11   : > { %1442 = vrot.lane.b32.xlu0 %v4515_v23, %s5027_s25 }
 0xd1d   : > { %v1584_v8 = vpop.f32.mrb[24].mxu1 }
 0xd1e   : > { %v3734_v9 = vpop.f32.mrb[25].mxu1 }
 0xd1f   : > { %v1587_v10 = vpop.f32.mrb[26].mxu1 }
 0xd20   : > { %v3735_v11 = vpop.f32.mrb[27].mxu1 }
 0xd88   : > { %v1438_v13 = vpop.xlane.xlu0 %1437 }
 0xd89   : > { %4063 = vrcp.f32 %v1438_v13 }
 0xd8c   : > { %v1443_v12 = vpop.permute.xlu0 %1442 }
 0xd8d   : > { %3717 = vmatpush3.bf16.msra.mxu0 %v1443_v12 }
 0xd8e   : > { %3718 = vmatprep.subr.bf16.mxu0 %v4214_v6 }
 0xd91   : > { %3719 = vmatpush3.bf16.msra.mxu0 %v1445_v14 }
 0xd92   : > { %3724 = vmatprep.subr.bf16.mxu0 %v4214_v6 }
 0xd93   : > { %v4064_v15 = vpop.eup %4063 }
 0xd94   : > { %v1440_v16 = vmul.f32 %v4064_v15, %v4062_v5 }
 0xd96   : > { %v1441_v18 = vpack.c.bf16 %v1440_v16, %v1440_v16 }
 0xd98   : > { %3721 = vmatmul.mubr.msk.bf16.vlgmr.msra.gmra.mrb[24].mxu0 %vm464_vm0, %v1441_v18 }
 0xd99   : > { %3725 = vmatpush3.bf16.msra.mxu0 %v4000_v17  ;;  %3726 = vmatprep.mubr.msk.bf16.mxu0 %vm4215_vm2, %v4214_v6 }
 0xd9a   : > { %3736 = vmatprep.subr.bf16.mxu0 %v4214_v6 }
 0xe6b   : > { %v1485_v20 = vpop.f32.mrb[24].mxu0 }
 0xe6c   : > { %v1491_v21 = vpack.c.bf16 %v1485_v20, %v1485_v20  ;;  %v3722_v23 = vpop.f32.mrb[25].mxu0 }
 0xe6d   : > { %v1488_v31 = vpop.f32.mrb[26].mxu0 }
 0xe6e   : > { %v3723_v32 = vpop.f32.mrb[27].mxu0  ;;  %3727 = vmatmul.mubr.msk.bf16.vlgmr.msra.gmra.mrb[28].mxu0 %vm533_vm1, %v1491_v21 }
 0xe6f   : > { %3740 = vmatprep.mubr.msk.bf16.mxu0 %vm4215_vm2, %v4214_v6  ;;  %3737 = vmatpush3.bf16.msra.mxu0 %v4001_v33 }
 0xe70   : > { %3738 = vmatprep.subr.bf16.mxu0 %v4214_v6 }
 0xe73   : > { %3739 = vmatpush3.bf16.msra.mxu0 %v4002_v35 }
 0xe74   : > { %3752 = vmatprep.subr.bf16.mxu0 %v4214_v6 }
 0xf41   : > { %v1535_v36 = vpop.f32.mrb[28].mxu0 }
 0xf42   : > { %v1585_v37 = vadd.f32 %v1584_v8, %v1535_v36  ;;  %v3728_v38 = vpop.f32.mrb[29].mxu0 }
 0xf43   : > { %v1538_v39 = vpop.f32.mrb[30].mxu0 }
 0xf44   : > { %v1590_v25 = vadd.f32 %v1585_v37, %v4495_v51  ;;  %v3729_v24 = vpop.f32.mrb[31].mxu0  ;;  %v1599_v51 = vsub.s32 1, %v4503_v19 }
 0xf46   : > { %v1596_v26 = vpack.c.bf16 %v1590_v25, %v1590_v25  ;;  %v1600_v30 = vrot.slane %v4481_v2, %v1599_v51 }
 0xf48   : > { %3741 = vmatmul.mubr.msk.bf16.vlgmr.msra.gmra.mrb[32].mxu0 %vm464_vm0, %v1596_v26  ;;  %v4005_v26 = vld [vmem:[%s5006_s5 + $0x50] sm:$0xff]  }
 0xf49   : > { %3754 = vmatprep.mubr.msk.bf16.mxu0 %vm4215_vm2, %v4214_v6 }
0x101b   : > { %v1650_v40 = vpop.f32.mrb[32].mxu0 }
0x101c   : > { %v1651_v41 = vadd.f32 %v1650_v40, %v1600_v30  ;;  %v3742_v42 = vpop.f32.mrb[33].mxu0 }
0x101d   : > { %v1653_v43 = vpop.f32.mrb[34].mxu0 }
0x101e   : > { %v1656_v44 = vmax.f32 %v1651_v41, 0.0  ;;  %v3743_v45 = vpop.f32.mrb[35].mxu0 }
0x1020   : > { %v4603_v46 = vadd.f32 %v1656_v44, %v1590_v25 }
0x1022   : > { %v1663_v47 = vpack.c.bf16 %v4603_v46, %v4603_v46 }
0x1024   : > { %3749 = vmatmul.mubr.msk.bf16.vlgmr.msra.gmra.mrb[28].mxu1 %vm464_vm0, %v1663_v47 }
0x1025   : > { %3760 = vmatprep.mubr.msk.bf16.mxu1 %vm4215_vm2, %v4214_v6 }
0x10f7   : > { %v1713_v3 = vpop.f32.mrb[28].mxu1 }
0x10f8   : > { %v1724_v4 = vpack.c.bf16 %v1713_v3, %v1713_v3  ;;  %v3750_v22 = vpop.f32.mrb[29].mxu1  ;;  %v4007_v3 = vld [vmem:[%s5006_s5 + $0x20] sm:$0xff]  }
0x10f9   : > { %v1716_v48 = vpop.f32.mrb[30].mxu1 }
0x10fa   : > { %1841 = vrot.lane.b32.xlu0 %v1724_v4, %s5027_s25  ;;  %1726 = vrot.lane.b32.xlu1 %v1724_v4, %s4209_s20  ;;  %v3751_v49 = vpop.f32.mrb[31].mxu1  ;;  %s5029_s25 = smov 64   ;;  %s4809_s20 = scalar_lea.vmem [#allocation4], %s3321_s28 }
0x10fe   : > { %1839 = vrot.lane.b32.xlu1 %v1724_v4, %s4212_s30  ;;  %s4710_s30 = scalar_lea.vmem [#allocation2], %s3321_s28  ;;  %s5016_s28 = sshll.u32 %s4294_s17, 6 }
0x10ff   : > { %s4924_s21 = scalar_lea.hbm %s5009_s8, %s5016_s28 }
0x116c   : > { %v1727_v50 = vpop.permute.xlu1 %1726  ;;  %v1842_v52 = vpop.permute.xlu0 %1841 }
0x116d   : > { %v1732_v27 = vsel %vm533_vm1, %v1727_v50, 0  ;;  %v1847_v54 = vsel %vm533_vm1, %v1842_v52, 0 }
0x116e   : > { %3753 = vmatpush3.bf16.xpose.msra.mxu0 %v1732_v27 }
0x116f   : > { %3764 = vmatprep.subr.bf16.mxu0 %v4214_v6 }
0x1170   : > { %v1840_v55 = vpop.permute.xlu1 %1839 }
0x1175   : > { %3755 = vmatmul.mubr.msk.bf16.vlgmr.msra.gmra.mrb[36].mxu0 %vm533_vm1, %v1724_v4 }
0x1176   : > { %3765 = vmatpush3.bf16.xpose.msra.mxu0 %v1847_v54  ;;  %3766 = vmatprep.mubr.msk.bf16.mxu0 %vm4215_vm2, %v4214_v6 }
0x1177   : > { %3776 = vmatprep.subr.bf16.mxu0 %v4214_v6 }
0x117d   : > { %3767 = vmatmul.mubr.msk.bf16.vlgmr.msra.gmra.mrb[40].mxu0 %vm533_vm1, %v1840_v55 }
0x117e   : > { %3778 = vmatprep.mubr.msk.bf16.mxu0 %vm4215_vm2, %v4214_v6  ;;  %3777 = vmatpush3.bf16.msra.mxu0 %v4006_v28  ;;  %v4765_v28 = vld [vmem:[%s5006_s5 + $0xc8] sm:$0xff]  }
0x117f   : > { %3788 = vmatprep.subr.bf16.mxu0 %v4214_v6 }
0x1248   : > { %v1768_v56 = vpop.f32.mrb[36].mxu0 }
0x1249   : > { %v1774_v57 = vmul.f32 0.25, %v1768_v56  ;;  %v3756_v58 = vpop.f32.mrb[37].mxu0 }
0x124a   : > { %v1771_v59 = vpop.f32.mrb[38].mxu0  ;;  %v4009_v58 = vld [vmem:[%s5006_s5 + $0x60] sm:$0xff]  }
0x124b   : > { %v3757_v60 = vpop.f32.mrb[39].mxu0  ;;  %v1775_v61 = vadd.f32 %v1774_v57, %v445_v34  ;;  %v4010_v59 = vld [vmem:[%s5006_s5 + $0x68] sm:$0xff]  }
0x124c   : > { %v2059_v60 = vsub.s32 2, %v4503_v19 }
0x124d   : > { %v1777_v62 = vsel %vm1776_vm7, %v1775_v61, -inf }
0x124e   : > { %1778 = vmax.xlane.f32.xlu0 %v1777_v62 }
0x1250   : > { %v1883_v63 = vpop.f32.mrb[40].mxu0 }
0x1251   : > { %v1889_v0 = vmul.f32 0.25, %v1883_v63  ;;  %v3768_v1 = vpop.f32.mrb[41].mxu0 }
0x1252   : > { %v1886_v5 = vpop.f32.mrb[42].mxu0 }
0x1253   : > { %v3769_v7 = vpop.f32.mrb[43].mxu0  ;;  %v1890_v8 = vadd.f32 %v1889_v0, %v445_v34 }
0x1255   : > { %v1891_v9 = vsel %vm1776_vm7, %v1890_v8, -inf }
0x1256   : > { %1892 = vmax.xlane.f32.xlu1 %v1891_v9 }
0x1267   : > { %1789 = vrot.lane.b32.xlu1 %v1724_v4, %s5029_s25  ;;  %s3150_s25 = sshll.u32 %s4710_s30, 4  ;;  %s3151_s25 = int_to_ptr.vmem [resolvable:$true] %s3150_s25 }
0x1268   : > { %s4113_s26 = scalar_lea.vmem %s3151_s25, 64  ;;  %p4120_p0 = scmp.lt.s32.totalorder %s3151_s25, %s4118_s1 }
0x1269   : > { %p4114_p11 = scmp.ne.s32.totalorder %s3151_s25, %s4113_s26  ;;  %p4121_p1 = scmp.lt.s32.totalorder %s4119_s2, %s4113_s26 }
0x126b   : > { %p4115_p12 = pnand %p4114_p11, %p4311_p5  ;;  %p4122_p2 = por %p4121_p1, %p4120_p0 }
0x126d   : > { %p4116_p13 = pneg %p4115_p12 }
0x126f   : > { %p4123_p3 = pnand %p4122_p2, %p4116_p13 }
0x12db   : > { %v1779_v10 = vpop.xlane.xlu0 %1778 }
0x12dc   : > { %v1780_v11 = vsub.f32 %v1775_v61, %v1779_v10  ;;  %v2060_v61 = vrot.slane %v4481_v2, %v2059_v60  ;;  %v4012_v10 = vld [vmem:[%s5006_s5 + $0x80] sm:$0xff]  }
0x12de   : > { %v1781_v13 = vmul.f32 1.442695, %v1780_v11  ;;  %v4013_v11 = vld [vmem:[%s5006_s5 + $0x78] sm:$0xff]  }
0x12e0   : > { %4065 = vpow2.f32 %v1781_v13  ;;  %v4014_v13 = vld [vmem:[%s5006_s5 + $0x88] sm:$0xff]  }
0x12e3   : > { %v1893_v12 = vpop.xlane.xlu1 %1892 }
0x12e4   : > { %v1894_v14 = vsub.f32 %v1890_v8, %v1893_v12  ;;  %v2126_v12 = vsub.s32 3, %v4503_v19 }
0x12e6   : > { %v1895_v15 = vmul.f32 1.442695, %v1894_v14  ;;  %v2127_v14 = vrot.slane %v4481_v2, %v2126_v12 }
0x12e7   : > { %v1790_v16 = vpop.permute.xlu1 %1789 }
0x12e8   : > { %4067 = vpow2.f32 %v1895_v15  ;;  %v1796_v17 = vsel %vm1120_vm4, %v1790_v16, 0  ;;  %v2251_v16 = vld [vmem:[%s419_s27] sm:$0xf]  ;;  %s3128_s27 = scalar_lea.sflag [#allocation3], %s4697_s18 }
0x12e9   : > { %3759 = vmatpush3.bf16.msra.mxu1 %v1796_v17 }
0x12ea   : > { %v4066_v18 = vpop.eup %4065  ;;  %3770 = vmatprep.subr.bf16.mxu1 %v4214_v6 }
0x12eb   : > { %v1783_v20 = vsel %vm1776_vm7, %v4066_v18, 0.0 }
0x12ec   : > { %1784 = vadd.xlane.f32.xlu0 %v1783_v20 }
0x12f2   : > { %v4068_v21 = vpop.eup %4067 }
0x12f3   : > { %v1897_v23 = vsel %vm1776_vm7, %v4068_v21, 0.0 }
0x12f4   : > { %1898 = vadd.xlane.f32.xlu0 %v1897_v23 }
0x130a   : > { %1903 = vrot.lane.b32.xlu0 %v1724_v4, %s5030_s12  ;;  %v4008_v4 = vld [vmem:[%s5006_s5 + $0x28] sm:$0xff]  }
0x1379   : > { %v1785_v31 = vpop.xlane.xlu0 %1784 }
0x137a   : > { %4069 = vrcp.f32 %v1785_v31 }
0x1381   : > { %v1899_v32 = vpop.xlane.xlu0 %1898 }
0x1382   : > { %4071 = vrcp.f32 %v1899_v32 }
0x1384   : > { %v4070_v33 = vpop.eup %4069 }
0x1385   : > { %v1787_v35 = vmul.f32 %v4070_v33, %v4066_v18  ;;  %v1904_v36 = vpop.permute.xlu0 %1903  ;;  %v4016_v33 = vld [vmem:[%s5006_s5 + $0xa0] sm:$0xff]  }
0x1386   : > { %v1909_v38 = vsel %vm1120_vm4, %v1904_v36, 0  ;;  %v4017_v36 = vld [vmem:[%s5006_s5 + $0x98] sm:$0xff]  }
0x1387   : > { %v1788_v37 = vpack.c.bf16 %v1787_v35, %v1787_v35 }
0x1389   : > { %3761 = vmatmul.mubr.msk.bf16.vlgmr.msra.gmra.mrb[32].mxu1 %vm1791_vm8, %v1788_v37  ;;  %v4018_v37 = vld [vmem:[%s5006_s5 + $0xa8] sm:$0xff]  }
0x138a   : > { %3771 = vmatpush3.bf16.msra.mxu1 %v1909_v38  ;;  %3772 = vmatprep.mubr.msk.bf16.mxu1 %vm4215_vm2, %v4214_v6  ;;  %v4734_v38 = vld [vmem:[%s5006_s5 + $0xb0] sm:$0xff]  }
0x138b   : > { %3782 = vmatprep.subr.bf16.mxu1 %v4214_v6 }
0x138c   : > { %v4072_v39 = vpop.eup %4071 }
0x138d   : > { %v1901_v25 = vmul.f32 %v4072_v39, %v4068_v21  ;;  %v4015_v21 = vld [vmem:[%s5006_s5 + $0x90] sm:$0xff]   ;;  %v4739_v39 = vld [vmem:[%s5008_s7 + $0x8] sm:$0x1f] }
0x138e   : > { %v4819_v60 = vrot.slane %v4739_v39, 2 }
0x138f   : > { %v1902_v24 = vpack.c.bf16 %v1901_v25, %v1901_v25  ;;  %v4745_v25 = vld [vmem:[%s5006_s5 + $0xc0] sm:$0xff]  }
0x1391   : > { %3773 = vmatmul.mubr.msk.bf16.vlgmr.msra.gmra.mrb[36].mxu1 %vm1791_vm8, %v1902_v24  ;;  %v2455_v24 = vpack.c.bf16 %v4739_v39, %v4739_v39 }
0x1392   : > { %3784 = vmatprep.mubr.msk.bf16.mxu1 %vm4215_vm2, %v4214_v6  ;;  %3783 = vmatpush3.bf16.msra.mxu1 %v4005_v26  ;;  %v4755_v26 = vld [vmem:[%s5006_s5 + $0xb8] sm:$0xff]  }
0x1393   : > { %3796 = vmatprep.subr.bf16.mxu1 %v4214_v6 }
0x145c   : > { %v1832_v29 = vpop.f32.mrb[32].mxu1 }
0x145d   : > { %v1838_v51 = vpack.c.bf16 %v1832_v29, %v1832_v29  ;;  %v3762_v30 = vpop.f32.mrb[33].mxu1  ;;  %v2457_v29 = vrot.slane %v2455_v24, 2 }
0x145e   : > { %v1835_v40 = vpop.f32.mrb[34].mxu1  ;;  %v4784_v30 = vld [vmem:[%s5006_s5 + $0xd8] sm:$0xff]  }
0x145f   : > { %v3763_v41 = vpop.f32.mrb[35].mxu1  ;;  %3785 = vmatmul.mubr.msk.bf16.vlgmr.msra.gmra.mrb[40].mxu1 %vm533_vm1, %v1838_v51  ;;  %v4774_v51 = vld [vmem:[%s5006_s5 + $0xd0] sm:$0xff]   ;;  %v2192_v40 = vsub.s32 4, %v4503_v19 }
0x1460   : > { %3800 = vmatprep.mubr.msk.bf16.mxu1 %vm4215_vm2, %v4214_v6  ;;  %3797 = vmatpush3.bf16.msra.mxu1 %v4009_v58 }
0x1461   : > { %3798 = vmatprep.subr.bf16.mxu1 %v4214_v6  ;;  %v2193_v41 = vrot.slane %v4481_v2, %v2192_v40 }
0x1464   : > { %v1945_v42 = vpop.f32.mrb[36].mxu1  ;;  %3799 = vmatpush3.bf16.msra.mxu1 %v4010_v59 }
0x1465   : > { %v1951_v43 = vpack.c.bf16 %v1945_v42, %v1945_v42  ;;  %v3774_v44 = vpop.f32.mrb[37].mxu1  ;;  %3812 = vmatprep.subr.bf16.mxu1 %v4214_v6 }
0x1466   : > { %v1948_v45 = vpop.f32.mrb[38].mxu1 }
0x1467   : > { %v3775_v47 = vpop.f32.mrb[39].mxu1  ;;  %3779 = vmatmul.mubr.msk.bf16.vlgmr.msra.gmra.mrb[44].mxu0 %vm533_vm1, %v1951_v43 }
0x1468   : > { %3792 = vmatprep.mubr.msk.bf16.mxu0 %vm4215_vm2, %v4214_v6  ;;  %3789 = vmatpush3.bf16.msra.mxu0 %v4007_v3 }
0x1469   : > { %3790 = vmatprep.subr.bf16.mxu0 %v4214_v6 }
0x146c   : > { %3791 = vmatpush3.bf16.msra.mxu0 %v4008_v4 }
0x146d   : > { %3804 = vmatprep.subr.bf16.mxu0 %v4214_v6 }
0x1532   : > { %v2044_v22 = vpop.f32.mrb[40].mxu1 }
0x1533   : > { %v3786_v48 = vpop.f32.mrb[41].mxu1 }
0x1534   : > { %v2047_v49 = vpop.f32.mrb[42].mxu1 }
0x1535   : > { %v3787_v50 = vpop.f32.mrb[43].mxu1 }
0x1536   : > { %v2261_v50 = vsub.s32 6, %v4503_v19 }
0x1538   : > { %v2262_v58 = vrot.slane %v4481_v2, %v2261_v50 }
0x153a   : > { %v1995_v27 = vpop.f32.mrb[44].mxu0 }
0x153b   : > { %v2045_v52 = vadd.f32 %v2044_v22, %v1995_v27  ;;  %v3780_v54 = vpop.f32.mrb[45].mxu0 }
0x153c   : > { %v1998_v55 = vpop.f32.mrb[46].mxu0 }
0x153d   : > { %v2050_v56 = vadd.f32 %v2045_v52, %v4603_v46  ;;  %v3781_v34 = vpop.f32.mrb[47].mxu0  ;;  %v4011_v46 = vld [vmem:[%s5006_s5 + $0x70] sm:$0xff]  }
0x153e   : > { %v2325_v34 = vsub.s32 7, %v4503_v19 }
0x153f   : > { %v2056_v57 = vpack.c.bf16 %v2050_v56, %v2050_v56 }
0x1541   : > { %3793 = vmatmul.mubr.msk.bf16.vlgmr.msra.gmra.mrb[48].mxu0 %vm464_vm0, %v2056_v57 }
0x1542   : > { %3808 = vmatprep.mubr.msk.bf16.mxu0 %vm4215_vm2, %v4214_v6  ;;  %3805 = vmatpush3.bf16.msra.mxu0 %v4011_v46  ;;  %v4816_v46 = vrot.slane %v4739_v39, 1 }
0x1543   : > { %3806 = vmatprep.subr.bf16.mxu0 %v4214_v6 }
0x1546   : > { %3807 = vmatpush3.bf16.msra.mxu0 %v4013_v11 }
0x1547   : > { %3820 = vmatprep.subr.bf16.mxu0 %v4214_v6 }
0x1614   : > { %v2110_v62 = vpop.f32.mrb[48].mxu0 }
0x1615   : > { %v2111_v63 = vadd.f32 %v2110_v62, %v2060_v61  ;;  %v3794_v0 = vpop.f32.mrb[49].mxu0  ;;  %v2326_v61 = vrot.slane %v4481_v2, %v2325_v34 }
0x1616   : > { %v2113_v1 = vpop.f32.mrb[50].mxu0 }
0x1617   : > { %v2116_v5 = vmax.f32 %v2111_v63, 0.0  ;;  %v3795_v7 = vpop.f32.mrb[51].mxu0 }
0x1619   : > { %v2117_v8 = vadd.f32 %v2116_v5, %v2050_v56 }
0x161b   : > { %v2118_v9 = vpack.c.bf16 %v2117_v8, %v2117_v8 }
0x161d   : > { %3801 = vmatmul.mubr.msk.bf16.vlgmr.msra.gmra.mrb[44].mxu1 %vm464_vm0, %v2118_v9 }
0x161e   : > { %3816 = vmatprep.mubr.msk.bf16.mxu1 %vm4215_vm2, %v4214_v6  ;;  %3813 = vmatpush3.bf16.msra.mxu1 %v4012_v10 }
0x161f   : > { %3814 = vmatprep.subr.bf16.mxu1 %v4214_v6 }
0x1622   : > { %3815 = vmatpush3.bf16.msra.mxu1 %v4014_v13 }
0x1623   : > { %3828 = vmatprep.subr.bf16.mxu1 %v4214_v6 }
0x16f0   : > { %v2177_v15 = vpop.f32.mrb[44].mxu1 }
0x16f1   : > { %v2178_v17 = vadd.f32 %v2177_v15, %v2127_v14  ;;  %v3802_v18 = vpop.f32.mrb[45].mxu1 }
0x16f2   : > { %v2180_v20 = vpop.f32.mrb[46].mxu1 }
0x16f3   : > { %v2184_v23 = vpack.c.bf16 %v2178_v17, %v2178_v17  ;;  %v2252_v31 = vadd.f32 %v2251_v16, %v2178_v17  ;;  %v3803_v32 = vpop.f32.mrb[47].mxu1  ;;  %2183 = vst.msk [vmem:[%s4710_s30] sm:$0xf] %vm1307_vm6, %v2178_v17 }
0x16f4   : > { %v4831_v32 = vrot.slane %v4739_v39, 3 }
0x16f5   : > { %v2253_v35 = vpack.c.bf16 %v2252_v31, %v2252_v31  ;;  %3809 = vmatmul.mubr.msk.bf16.vlgmr.msra.gmra.mrb[52].mxu0 %vm464_vm0, %v2184_v23 }
0x16f6   : > { %3821 = vmatpush3.bf16.msra.mxu0 %v4015_v21  ;;  %3824 = vmatprep.mubr.msk.bf16.mxu0 %vm4215_vm2, %v4214_v6 }
0x16f7   : > { %3817 = vmatmul.mubr.msk.bf16.vlgmr.msra.gmra.mrb[48].mxu1 %vm464_vm0, %v2253_v35  ;;  %3822 = vmatprep.subr.bf16.mxu0 %v4214_v6 }
0x16f8   : > { %3829 = vmatpush3.bf16.msra.mxu1 %v4016_v33  ;;  %3832 = vmatprep.mubr.msk.bf16.mxu1 %vm4215_vm2, %v4214_v6 }
0x16f9   : > { %3830 = vmatprep.subr.bf16.mxu1 %v4214_v6 }
0x16fa   : > { %3823 = vmatpush3.bf16.msra.mxu0 %v4017_v36 }
0x16fb   : > { %3836 = vmatprep.subr.bf16.mxu0 %v4214_v6 }
0x16fc   : > { %3831 = vmatpush3.bf16.msra.mxu1 %v4018_v37 }
0x16fd   : > { %3825 = vmatmul.mubr.msk.bf16.vlgmr.msra.gmra.mrb[56].mxu0 %vm464_vm0, %v2253_v35  ;;  %3844 = vmatprep.subr.bf16.mxu1 %v4214_v6 }
0x16fe   : > { %3837 = vmatpush3.bf16.msra.mxu0 %v4734_v38  ;;  %3840 = vmatprep.mubr.msk.bf16.mxu0 %vm4215_vm2, %v4214_v6 }
0x16ff   : > { %3833 = vmatmul.mubr.msk.bf16.vlgmr.msra.gmra.mrb[52].mxu1 %vm464_vm0, %v2253_v35  ;;  %3838 = vmatprep.subr.bf16.mxu0 %v4214_v6  ;;  %v2387_v35 = vrot.slane %v4739_v39, %v1032_v53 }
0x1700   : > { %3845 = vmatpush3.bf16.msra.mxu1 %v4745_v25  ;;  %3848 = vmatprep.mubr.msk.bf16.mxu1 %vm4215_vm2, %v4214_v6 }
0x1701   : > { %3846 = vmatprep.subr.bf16.mxu1 %v4214_v6 }
0x1702   : > { %3839 = vmatpush3.bf16.msra.mxu0 %v4755_v26 }
0x1703   : > { %3852 = vmatprep.subr.bf16.mxu0 %v4214_v6 }
0x1704   : > { %3847 = vmatpush3.bf16.msra.mxu1 %v4765_v28 }
0x1705   : > { %3841 = vmatmul.mubr.msk.bf16.vlgmr.msra.gmra.mrb[60].mxu0 %vm464_vm0, %v2457_v29  ;;  %3860 = vmatprep.subr.bf16.mxu1 %v4214_v6 }
0x1706   : > { %3853 = vmatpush3.bf16.msra.mxu0 %v4774_v51  ;;  %3856 = vmatprep.mubr.msk.bf16.mxu0 %vm4215_vm2, %v4214_v6 }
0x1707   : > { %3849 = vmatmul.mubr.msk.bf16.vlgmr.msra.gmra.mrb[56].mxu1 %vm464_vm0, %v2457_v29  ;;  %3854 = vmatprep.subr.bf16.mxu0 %v4214_v6 }
0x1708   : > { %3861 = vmatpush3.bf16.msra.mxu1 %v4734_v38  ;;  %3864 = vmatprep.mubr.msk.bf16.mxu1 %vm4215_vm2, %v4214_v6 }
0x1709   : > { %3862 = vmatprep.subr.bf16.mxu1 %v4214_v6 }
0x170a   : > { %3855 = vmatpush3.bf16.msra.mxu0 %v4784_v30 }
0x170b   : > { %3868 = vmatprep.subr.bf16.mxu0 %v4214_v6 }
0x170c   : > { %3863 = vmatpush3.bf16.msra.mxu1 %v4755_v26 }
0x170d   : > { %3857 = vmatmul.mubr.msk.bf16.vlgmr.msra.gmra.mrb[64].mxu0 %vm464_vm0, %v2457_v29  ;;  %3876 = vmatprep.subr.bf16.mxu1 %v4214_v6 }
0x170e   : > { %3869 = vmatpush3.bf16.msra.mxu0 %v4745_v25  ;;  %3872 = vmatprep.mubr.msk.bf16.mxu0 %vm4215_vm2, %v4214_v6 }
0x170f   : > { %3870 = vmatprep.subr.bf16.mxu0 %v4214_v6 }
0x1712   : > { %3871 = vmatpush3.bf16.msra.mxu0 %v4765_v28 }
0x1713   : > { %3884 = vmatprep.subr.bf16.mxu0 %v4214_v6 }
0x17c8   : > { %v2243_v42 = vpop.f32.mrb[52].mxu0 }
0x17c9   : > { %v2244_v43 = vadd.f32 %v2243_v42, %v2193_v41  ;;  %v3810_v44 = vpop.f32.mrb[53].mxu0 }
0x17ca   : > { %v2246_v45 = vpop.f32.mrb[54].mxu0  ;;  %v2312_v47 = vpop.f32.mrb[48].mxu1 }
0x17cb   : > { %v3811_v3 = vpop.f32.mrb[55].mxu0  ;;  %v3818_v4 = vpop.f32.mrb[49].mxu1  ;;  %2250 = vst.msk [vmem:[%s4809_s20] sm:$0xf] %vm2249_vm9, %v2244_v43  ;;  %v4822_v63 = vadd.f32 %v2312_v47, %v2262_v58  ;;  %v2643_v43 = vrot.slane %v4739_v39, 4 }
0x17cc   : > { %v2315_v22 = vpop.f32.mrb[50].mxu1 }
0x17cd   : > { %v3819_v48 = vpop.f32.mrb[51].mxu1 }
0x17d0   : > { %v2373_v49 = vpop.f32.mrb[56].mxu0 }
0x17d1   : > { %v3826_v27 = vpop.f32.mrb[57].mxu0  ;;  %v4827_v13 = vadd.f32 %v2373_v49, %v2326_v61 }
0x17d2   : > { %v2376_v52 = vpop.f32.mrb[58].mxu0  ;;  %v2434_v54 = vpop.f32.mrb[52].mxu1 }
0x17d3   : > { %v3827_v55 = vpop.f32.mrb[59].mxu0  ;;  %v3834_v56 = vpop.f32.mrb[53].mxu1  ;;  %v4837_v29 = vadd.f32 %v2434_v54, %v2387_v35 }
0x17d4   : > { %v2437_v57 = vpop.f32.mrb[54].mxu1 }
0x17d5   : > { %v3835_v59 = vpop.f32.mrb[55].mxu1 }
0x17d8   : > { %v2510_v62 = vpop.f32.mrb[60].mxu0 }
0x17d9   : > { %v2511_v0 = vadd.f32 %v2510_v62, %v4816_v46  ;;  %v3842_v1 = vpop.f32.mrb[61].mxu0 }
0x17da   : > { %v2513_v5 = vpop.f32.mrb[62].mxu0  ;;  %v2564_v7 = vpop.f32.mrb[56].mxu1 }
0x17db   : > { %v2624_v8 = vadd.f32 %v2511_v0, %v4822_v63  ;;  %v2565_v9 = vadd.f32 %v2564_v7, %v4819_v60  ;;  %v3843_v10 = vpop.f32.mrb[63].mxu0  ;;  %v3850_v11 = vpop.f32.mrb[57].mxu1 }
0x17dc   : > { %v2567_v12 = vpop.f32.mrb[58].mxu1 }
0x17dd   : > { %v3466_v14 = vmul.f32 -1.442695, %v2624_v8  ;;  %v3851_v15 = vpop.f32.mrb[59].mxu1  ;;  %v2631_v2 = vadd.f32 %v2565_v9, %v4827_v13 }
0x17df   : > { %4073 = vpow2.f32 %v3466_v14  ;;  %v3467_v18 = vmul.f32 -1.442695, %v2631_v2 }
0x17e0   : > { %v2618_v16 = vpop.f32.mrb[64].mxu0 }
0x17e1   : > { %v3858_v17 = vpop.f32.mrb[65].mxu0  ;;  %4075 = vpow2.f32 %v3467_v18  ;;  %v2619_v37 = vadd.f32 %v2618_v16, %v4831_v32 }
0x17e2   : > { %v2621_v20 = vpop.f32.mrb[66].mxu0 }
0x17e3   : > { %v3859_v21 = vpop.f32.mrb[67].mxu0 }
0x17e9   : > { %v4074_v23 = vpop.eup %4073 }
0x17ea   : > { %v2628_v31 = vadd.f32 1.0, %v4074_v23 }
0x17eb   : > { %v4076_v33 = vpop.eup %4075 }
0x17ec   : > { %4077 = vrcp.f32 %v2628_v31  ;;  %v2635_v36 = vadd.f32 1.0, %v4076_v33 }
0x17ee   : > { %4079 = vrcp.f32 %v2635_v36 }
0x17f6   : > { %v4078_v24 = vpop.eup %4077 }
0x17f7   : > { %v2638_v40 = vmul.f32 %v4078_v24, %v2619_v37 }
0x17f8   : > { %v4080_v42 = vpop.eup %4079 }
0x17f9   : > { %v2639_v41 = vadd.f32 %v2638_v40, %v4837_v29  ;;  %v2641_v44 = vsub.f32 1.0, %v4080_v42  ;;  %v2645_v47 = vmul.f32 %v4080_v42, %v2643_v43 }
0x17fb   : > { %4081 = vtanh.f32 %v2639_v41 }
0x1805   : > { %v4082_v45 = vpop.eup %4081 }
0x1806   : > { %v2642_v19 = vmul.f32 %v4082_v45, %v2641_v44 }
0x1808   : > { %v4841_v3 = vadd.f32 %v2645_v47, %v2642_v19 }
0x180a   : > { %v2647_v53 = vpack.c.bf16 %v4841_v3, %v4841_v3  ;;  %v2800_v18 = vrot.slane %v4841_v3, 7 }
0x180c   : > { %3865 = vmatmul.mubr.msk.bf16.vlgmr.msra.gmra.mrb[60].mxu1 %vm464_vm0, %v2647_v53  ;;  %3873 = vmatmul.mubr.msk.bf16.vlgmr.msra.gmra.mrb[68].mxu0 %vm464_vm0, %v2647_v53 }
0x180d   : > { %3877 = vmatpush3.bf16.msra.mxu1 %v4774_v51  ;;  %3880 = vmatprep.mubr.msk.bf16.mxu1 %vm4215_vm2, %v4214_v6 }
0x180e   : > { %3878 = vmatprep.subr.bf16.mxu1 %v4214_v6  ;;  %3885 = vmatpush3.bf16.msra.mxu0 %v4734_v38 }
0x180f   : > { %3886 = vmatprep.subr.bf16.mxu0 %v4214_v6  ;;  %3888 = vmatprep.mubr.msk.bf16.mxu0 %vm4215_vm2, %v4214_v6 }
0x1811   : > { %3879 = vmatpush3.bf16.msra.mxu1 %v4784_v30 }
0x1812   : > { %3892 = vmatprep.subr.bf16.mxu1 %v4214_v6  ;;  %3887 = vmatpush3.bf16.msra.mxu0 %v4755_v26 }
0x1813   : > { %3900 = vmatprep.subr.bf16.mxu0 %v4214_v6 }
0x1814   : > { %3881 = vmatmul.mubr.msk.bf16.vlgmr.msra.gmra.mrb[64].mxu1 %vm464_vm0, %v2647_v53 }
0x1815   : > { %3893 = vmatpush3.bf16.msra.mxu1 %v4745_v25  ;;  %3896 = vmatprep.mubr.msk.bf16.mxu1 %vm4215_vm2, %v4214_v6 }
0x1816   : > { %3894 = vmatprep.subr.bf16.mxu1 %v4214_v6 }
0x1819   : > { %3895 = vmatpush3.bf16.msra.mxu1 %v4765_v28 }
0x181a   : > { %3908 = vmatprep.subr.bf16.mxu1 %v4214_v6 }
0x18df   : > { %v2685_v39 = vpop.f32.mrb[60].mxu1  ;;  %v2725_v4 = vpop.f32.mrb[68].mxu0 }
0x18e0   : > { %v2686_v22 = vadd.f32 %v2685_v39, %v4816_v46  ;;  %v2726_v48 = vadd.f32 %v2725_v4, %v4819_v60  ;;  %v3866_v49 = vpop.f32.mrb[61].mxu1  ;;  %v3874_v50 = vpop.f32.mrb[69].mxu0 }
0x18e1   : > { %v2688_v27 = vpop.f32.mrb[62].mxu1  ;;  %v2728_v52 = vpop.f32.mrb[70].mxu0 }
0x18e2   : > { %v2772_v54 = vrot.slane %v2686_v22, 7  ;;  %v3867_v55 = vpop.f32.mrb[63].mxu1  ;;  %v3875_v56 = vpop.f32.mrb[71].mxu0  ;;  %v2782_v34 = vrot.slane %v2726_v48, 7 }
0x18e4   : > { %v2774_v57 = vadd.f32 %v2772_v54, %v4822_v63  ;;  %v2784_v59 = vadd.f32 %v2782_v34, %v4827_v13 }
0x18e6   : > { %v3471_v58 = vmul.f32 -1.442695, %v2774_v57  ;;  %v3472_v5 = vmul.f32 -1.442695, %v2784_v59 }
0x18e7   : > { %v2765_v61 = vpop.f32.mrb[64].mxu1 }
0x18e8   : > { %4083 = vpow2.f32 %v3471_v58  ;;  %v3882_v62 = vpop.f32.mrb[65].mxu1  ;;  %v2766_v10 = vadd.f32 %v2765_v61, %v4831_v32 }
0x18e9   : > { %v2768_v0 = vpop.f32.mrb[66].mxu1  ;;  %4085 = vpow2.f32 %v3472_v5 }
0x18ea   : > { %v3883_v1 = vpop.f32.mrb[67].mxu1  ;;  %v2792_v12 = vrot.slane %v2766_v10, 7 }
0x18f2   : > { %v4084_v7 = vpop.eup %4083 }
0x18f3   : > { %v2778_v8 = vadd.f32 1.0, %v4084_v7  ;;  %v4086_v9 = vpop.eup %4085 }
0x18f4   : > { %v2788_v11 = vadd.f32 1.0, %v4086_v9 }
0x18f5   : > { %4087 = vrcp.f32 %v2778_v8 }
0x18f6   : > { %4089 = vrcp.f32 %v2788_v11 }
0x18ff   : > { %v4088_v14 = vpop.eup %4087 }
0x1900   : > { %v2794_v15 = vmul.f32 %v4088_v14, %v2792_v12  ;;  %v4090_v16 = vpop.eup %4089 }
0x1901   : > { %v2797_v17 = vsub.f32 1.0, %v4090_v16  ;;  %v2802_v21 = vmul.f32 %v4090_v16, %v2800_v18 }
0x1902   : > { %v2795_v2 = vadd.f32 %v2794_v15, %v4837_v29 }
0x1904   : > { %4091 = vtanh.f32 %v2795_v2 }
0x190e   : > { %v4092_v20 = vpop.eup %4091 }
0x190f   : > { %v2798_v23 = vmul.f32 %v4092_v20, %v2797_v17 }
0x1911   : > { %v2803_v31 = vadd.f32 %v2802_v21, %v2798_v23 }
0x1913   : > { %v2804_v33 = vpack.c.bf16 %v2803_v31, %v2803_v31  ;;  %v2960_v34 = vrot.slane %v2803_v31, 7  ;;  %v3123_v7 = vsel %vm1118_vm3, %v4841_v3, %v2803_v31 }
0x1915   : > { %v2806_v35 = vshrl.u32 %v2804_v33, 16 }
0x1917   : > { %3889 = vmatmul.mubr.msk.bf16.vlgmr.msra.gmra.mrb[72].mxu0 %vm464_vm0, %v2806_v35  ;;  %3897 = vmatmul.mubr.msk.bf16.vlgmr.msra.gmra.mrb[68].mxu1 %vm464_vm0, %v2806_v35 }
0x1918   : > { %3901 = vmatpush3.bf16.msra.mxu0 %v4774_v51  ;;  %3904 = vmatprep.mubr.msk.bf16.mxu0 %vm4215_vm2, %v4214_v6 }
0x1919   : > { %3902 = vmatprep.subr.bf16.mxu0 %v4214_v6  ;;  %3909 = vmatpush3.bf16.msra.mxu1 %v4734_v38 }
0x191a   : > { %3910 = vmatprep.subr.bf16.mxu1 %v4214_v6  ;;  %3912 = vmatprep.mubr.msk.bf16.mxu1 %vm4215_vm2, %v4214_v6 }
0x191c   : > { %3903 = vmatpush3.bf16.msra.mxu0 %v4784_v30 }
0x191d   : > { %3916 = vmatprep.subr.bf16.mxu0 %v4214_v6  ;;  %3911 = vmatpush3.bf16.msra.mxu1 %v4755_v26 }
0x191e   : > { %3924 = vmatprep.subr.bf16.mxu1 %v4214_v6 }
0x191f   : > { %3905 = vmatmul.mubr.msk.bf16.vlgmr.msra.gmra.mrb[76].mxu0 %vm464_vm0, %v2806_v35 }
0x1920   : > { %3917 = vmatpush3.bf16.msra.mxu0 %v4745_v25  ;;  %3920 = vmatprep.mubr.msk.bf16.mxu0 %vm4215_vm2, %v4214_v6 }
0x1921   : > { %3918 = vmatprep.subr.bf16.mxu0 %v4214_v6 }
0x1924   : > { %3919 = vmatpush3.bf16.msra.mxu0 %v4765_v28 }
0x19ea   : > { %v2845_v38 = vpop.f32.mrb[72].mxu0  ;;  %v2885_v36 = vpop.f32.mrb[68].mxu1 }
0x19eb   : > { %v2846_v37 = vadd.f32 %v2845_v38, %v4816_v46  ;;  %v2886_v24 = vadd.f32 %v2885_v36, %v4819_v60  ;;  %v3890_v26 = vpop.f32.mrb[73].mxu0  ;;  %v3898_v40 = vpop.f32.mrb[69].mxu1 }
0x19ec   : > { %v2848_v41 = vpop.f32.mrb[74].mxu0  ;;  %v2888_v42 = vpop.f32.mrb[70].mxu1 }
0x19ed   : > { %v2932_v43 = vrot.slane %v2846_v37, 6  ;;  %v2942_v44 = vrot.slane %v2886_v24, 6  ;;  %v3891_v25 = vpop.f32.mrb[75].mxu0  ;;  %v3899_v45 = vpop.f32.mrb[71].mxu1 }
0x19ef   : > { %v2934_v47 = vadd.f32 %v2932_v43, %v4822_v63  ;;  %v2944_v19 = vadd.f32 %v2942_v44, %v4827_v13 }
0x19f1   : > { %v3476_v53 = vmul.f32 -1.442695, %v2934_v47  ;;  %v3477_v28 = vmul.f32 -1.442695, %v2944_v19 }
0x19f2   : > { %v2925_v39 = vpop.f32.mrb[76].mxu0 }
0x19f3   : > { %4093 = vpow2.f32 %v3476_v53  ;;  %v3906_v4 = vpop.f32.mrb[77].mxu0  ;;  %v2926_v54 = vadd.f32 %v2925_v39, %v4831_v32 }
0x19f4   : > { %4095 = vpow2.f32 %v3477_v28  ;;  %v2928_v22 = vpop.f32.mrb[78].mxu0 }
0x19f5   : > { %v3907_v48 = vpop.f32.mrb[79].mxu0  ;;  %v2952_v55 = vrot.slane %v2926_v54, 6 }
0x19fd   : > { %v4094_v49 = vpop.eup %4093 }
0x19fe   : > { %v4096_v50 = vpop.eup %4095  ;;  %v2938_v27 = vadd.f32 1.0, %v4094_v49 }
0x19ff   : > { %v2948_v52 = vadd.f32 1.0, %v4096_v50 }
0x1a00   : > { %4097 = vrcp.f32 %v2938_v27 }
0x1a01   : > { %4099 = vrcp.f32 %v2948_v52 }
0x1a0a   : > { %v4098_v56 = vpop.eup %4097 }
0x1a0b   : > { %v4100_v57 = vpop.eup %4099  ;;  %v2954_v58 = vmul.f32 %v4098_v56, %v2952_v55 }
0x1a0c   : > { %v2962_v59 = vmul.f32 %v4100_v57, %v2960_v34  ;;  %v2957_v62 = vsub.f32 1.0, %v4100_v57 }
0x1a0d   : > { %v2955_v61 = vadd.f32 %v2954_v58, %v4837_v29 }
0x1a0f   : > { %4101 = vtanh.f32 %v2955_v61 }
0x1a19   : > { %v4102_v0 = vpop.eup %4101 }
0x1a1a   : > { %v2958_v1 = vmul.f32 %v4102_v0, %v2957_v62 }
0x1a1c   : > { %v4899_v5 = vadd.f32 %v2962_v59, %v2958_v1 }
0x1a1e   : > { %v2964_v8 = vpack.c.bf16 %v4899_v5, %v4899_v5  ;;  %v4907_v9 = vsel %vm1120_vm4, %v3123_v7, %v4899_v5 }
0x1a20   : > { %v2966_v10 = vrot.slane %v2964_v8, 1 }
0x1a22   : > { %3913 = vmatmul.mubr.msk.bf16.vlgmr.msra.gmra.mrb[72].mxu1 %vm464_vm0, %v2966_v10  ;;  %3921 = vmatmul.mubr.msk.bf16.vlgmr.msra.gmra.mrb[80].mxu0 %vm464_vm0, %v2966_v10 }
0x1a23   : > { %3925 = vmatpush3.bf16.msra.mxu1 %v4774_v51  ;;  %3928 = vmatprep.mubr.msk.bf16.mxu1 %vm4215_vm2, %v4214_v6 }
0x1a24   : > { %3926 = vmatprep.subr.bf16.mxu1 %v4214_v6 }
0x1a27   : > { %3927 = vmatpush3.bf16.msra.mxu1 %v4784_v30 }
0x1a2a   : > { %3929 = vmatmul.mubr.msk.bf16.vlgmr.msra.gmra.mrb[76].mxu1 %vm464_vm0, %v2966_v10 }
0x1a2b   : > { %4126 = shalt.err (!%p4123_p3)
}
0x1a2c   : > { %s4127_s30 = scalar_lea.hbm %s4924_s21, 64  ;;  %s4131_s0 = scalar_lea.hbm %s5009_s8, 128 }
0x1a2d   : > { %p4128_p4 = scmp.ne.s32.totalorder %s4924_s21, %s4127_s30  ;;  %p4132_p9 = scmp.lt.u32.totalorder %s4924_s21, %s5009_s8 }
0x1a2e   : > { %p4133_p10 = scmp.lt.u32.totalorder %s4131_s0, %s4127_s30  ;;  %p4135_p12 = scmp.lt.u32.totalorder %s4127_s30, %s4924_s21 }
0x1a2f   : > { %p4129_p7 = pnand %p4128_p4, %p4311_p5 }
0x1a30   : > { %p4134_p11 = por %p4133_p10, %p4132_p9 }
0x1a31   : > { %p4130_p8 = pneg %p4129_p7 }
0x1a32   : > { %p4136_p13 = por %p4135_p12, %p4134_p11 }
0x1a34   : > { %p4137_p0 = pnand %p4136_p13, %p4130_p8 }
0x1a36   : > { %4140 = shalt.err (!%p4137_p0)
}
0x1a37   : > { %3940 = dma.vmem_to_hbm [thread:$0]  (%p4311_p5), %s3151_s25, 64, %s4924_s21, %s3128_s27  }
0x1a38   : > { %s5032_s2 = sshll.u32 %s4294_s17, 6  ;;  %s3163_s29 = sshll.u32 %s4809_s20, 4  ;;  %s3164_s29 = int_to_ptr.vmem [resolvable:$true] %s3163_s29 }
0x1a39   : > { %s4949_s28 = scalar_lea.hbm %s5010_s9, %s5032_s2  ;;  %s3133_s30 = scalar_lea.sflag [#allocation5], %s4697_s18 }
0x1a3a   : > { %s4141_s0 = scalar_lea.vmem %s3164_s29, 64  ;;  %s4217_s1 = smov [#allocation4]  }
0x1a3b   : > { %p4142_p1 = scmp.ne.s32.totalorder %s3164_s29, %s4141_s0  ;;  %s4145_s3 = sshll.u32 %s4217_s1, 4  ;;  %s4146_s3 = int_to_ptr.vmem [resolvable:$false] %s4145_s3 }
0x1a3c   : > { %s4147_s4 = scalar_lea.vmem %s4146_s3, 128  ;;  %p4148_p4 = scmp.lt.s32.totalorder %s3164_s29, %s4146_s3 }
0x1a3d   : > { %p4143_p2 = pnand %p4142_p1, %p4311_p5  ;;  %p4149_p7 = scmp.lt.s32.totalorder %s4147_s4, %s4141_s0 }
0x1a3f   : > { %p4144_p3 = pneg %p4143_p2  ;;  %p4150_p8 = por %p4149_p7, %p4148_p4 }
0x1a41   : > { %p4151_p9 = pnand %p4150_p8, %p4144_p3 }
0x1a43   : > { %4154 = shalt.err (!%p4151_p9)
}
0x1a44   : > { %s4155_s17 = scalar_lea.hbm %s4949_s28, 64  ;;  %s4159_s25 = scalar_lea.hbm %s5010_s9, 128 }
0x1a45   : > { %p4156_p10 = scmp.ne.s32.totalorder %s4949_s28, %s4155_s17  ;;  %p4160_p13 = scmp.lt.u32.totalorder %s4949_s28, %s5010_s9 }
0x1a46   : > { %p4161_p0 = scmp.lt.u32.totalorder %s4159_s25, %s4155_s17  ;;  %p4163_p2 = scmp.lt.u32.totalorder %s4155_s17, %s4949_s28 }
0x1a47   : > { %p4157_p11 = pnand %p4156_p10, %p4311_p5 }
0x1a48   : > { %p4162_p1 = por %p4161_p0, %p4160_p13 }
0x1a49   : > { %p4158_p12 = pneg %p4157_p11 }
0x1a4a   : > { %p4164_p3 = por %p4163_p2, %p4162_p1 }
0x1a4c   : > { %p4165_p4 = pnand %p4164_p3, %p4158_p12 }
0x1a4e   : > { %4168 = shalt.err (!%p4165_p4)
}
0x1a4f   : > { %3941 = dma.vmem_to_hbm [thread:$0]  (%p4311_p5), %s3164_s29, 64, %s4949_s28, %s3133_s30  }
0x1a50   : > { %s432_s27 = scalar_lea.vmem %s5011_s10, %s4529_s11 }
0x1af5   : > { %v3004_v6 = vpop.f32.mrb[72].mxu1  ;;  %v3044_v51 = vpop.f32.mrb[80].mxu0 }
0x1af6   : > { %v3005_v30 = vadd.f32 %v3004_v6, %v4816_v46  ;;  %v3045_v3 = vadd.f32 %v3044_v51, %v4819_v60  ;;  %v3914_v11 = vpop.f32.mrb[73].mxu1  ;;  %v3922_v12 = vpop.f32.mrb[81].mxu0 }
0x1af7   : > { %v3007_v14 = vpop.f32.mrb[74].mxu1  ;;  %v3047_v15 = vpop.f32.mrb[82].mxu0 }
0x1af8   : > { %v3091_v2 = vrot.slane %v3005_v30, 5  ;;  %v3101_v16 = vrot.slane %v3045_v3, 5  ;;  %v3915_v17 = vpop.f32.mrb[75].mxu1  ;;  %v3923_v18 = vpop.f32.mrb[83].mxu0 }
0x1afa   : > { %v3093_v20 = vadd.f32 %v3091_v2, %v4822_v63  ;;  %v3103_v21 = vadd.f32 %v3101_v16, %v4827_v13  ;;  %v3119_v13 = vrot.slane %v4899_v5, 7 }
0x1afc   : > { %v3481_v23 = vmul.f32 -1.442695, %v3093_v20  ;;  %v3482_v31 = vmul.f32 -1.442695, %v3103_v21 }
0x1afd   : > { %v3084_v33 = vpop.f32.mrb[76].mxu1 }
0x1afe   : > { %4103 = vpow2.f32 %v3481_v23  ;;  %v3930_v35 = vpop.f32.mrb[77].mxu1  ;;  %v3085_v26 = vadd.f32 %v3084_v33, %v4831_v32 }
0x1aff   : > { %4105 = vpow2.f32 %v3482_v31  ;;  %v3087_v46 = vpop.f32.mrb[78].mxu1 }
0x1b00   : > { %v3931_v60 = vpop.f32.mrb[79].mxu1  ;;  %v3111_v63 = vrot.slane %v3085_v26, 5 }
0x1b08   : > { %v4104_v38 = vpop.eup %4103 }
0x1b09   : > { %v4106_v36 = vpop.eup %4105  ;;  %v3097_v37 = vadd.f32 1.0, %v4104_v38 }
0x1b0a   : > { %v3107_v24 = vadd.f32 1.0, %v4106_v36 }
0x1b0b   : > { %4107 = vrcp.f32 %v3097_v37 }
0x1b0c   : > { %4109 = vrcp.f32 %v3107_v24 }
0x1b15   : > { %v4108_v40 = vpop.eup %4107 }
0x1b16   : > { %v4110_v41 = vpop.eup %4109  ;;  %v3113_v42 = vmul.f32 %v4108_v40, %v3111_v63 }
0x1b17   : > { %v3121_v43 = vmul.f32 %v4110_v41, %v3119_v13  ;;  %v3116_v25 = vsub.f32 1.0, %v4110_v41 }
0x1b18   : > { %v3114_v44 = vadd.f32 %v3113_v42, %v4837_v29 }
0x1b1a   : > { %4111 = vtanh.f32 %v3114_v44 }
0x1b24   : > { %v4112_v45 = vpop.eup %4111 }
0x1b25   : > { %v3117_v47 = vmul.f32 %v4112_v45, %v3116_v25 }
0x1b27   : > { %v3122_v19 = vadd.f32 %v3121_v43, %v3117_v47 }
0x1b29   : > { %v3125_v32 = vsel %vm1122_vm5, %v4907_v9, %v3122_v19 }
0x1b2a   : > { %3126 = vst.msk [vmem:[%s432_s27] sm:$0xf] %vm1307_vm6, %v3125_v32 }
0x1b2b PF: > { %p3951_p5 = scmp.ge.s32.totalorder %s4207_s16, 2  ;;  %s3178_s2 = sand.u32 1, %s4195_s13  }
0x1b2c   : > { %s3179_s26 = scalar_lea.sflag [#allocation3], %s3178_s2 }
0x1b2d   : > { %p3945_p7 = pnand %p3951_p5, %p4315_p6 }
0x1b2f   : > { %4186 = dma.done.wait (!%p3945_p7), %s3179_s26, 64  }
0x1b30   : > { %4188 = vsyncadd (!%p3945_p7), %s3179_s26, 4294967232  ;;  %s3188_s12 = scalar_lea.sflag [#allocation5], %s3178_s2 }
0x1b31   : > { %4190 = dma.done.wait (!%p3945_p7), %s3188_s12, 64  }
0x1b32   : > { %4192 = vsyncadd (!%p3945_p7), %s3188_s12, 4294967232  ;;  %p24_p8 = scmp.ge.s32.totalorder %s4298_s19, 4   ;;  %s5033_s13 = smov %s4199_s14 }
0x1b33   : > { %s5034_s14 = smov %s4203_s15  ;;  %s5035_s15 = smov %s4309_s22 }
0x1b34   : > { %s5036_s16 = smov %s4298_s19  ;;  %26 = sbr.rel (!%p24_p8) target bundleno = 11 (0xb), region = 140 }
0x1b3b   :  { %3200 = vsyncpa [#allocation3], 1 }
0x1b3c   :  { %3202 = vsyncpa [#allocation3 + $0x1], 1 }
0x1b3d   :  { %3203 = vsyncpa [#allocation5], 1 }
0x1b3e   :  { %3205 = vsyncpa [#allocation5 + $0x1], 1 }

</bundles_post_ra>
